<compile_context>
chip_gen: v7x
topology: tpu7x:2x2x1
jax: 0.10.0
libtpu: 0.0.40
codegen_flags: <defaults>
</compile_context>

<pallas_src>
import functools

import jax
import jax.numpy as jnp
from jax.experimental import pallas as pl
from jax.experimental.pallas import tpu as pltpu

_LANES = 128
_SUBLANES = 8
_ROW_MULT = 32  # keeps int8/bf16 label tiles legal as well as f32


def _contrastive_loss_kernel(x_ref, y_ref, acc_ref, *, margin, num_blocks,
                             blocks_per_split, block_rows, tail_rows,
                             oob_gate):
    c = pl.program_id(0)               # split (TensorCore) index
    j = pl.program_id(1)               # row-block index within the split
    j_global = c * blocks_per_split + j

    @pl.when(j == 0)
    def _init():
        acc_ref[...] = jnp.zeros_like(acc_ref)

    def body():
        x = x_ref[...].astype(jnp.float32)      # (block_rows, 128) distances
        y = y_ref[...].astype(jnp.float32)      # (block_rows, 128) labels

        # hinge = clamp(margin - x, min=0)
        h = jnp.maximum(jnp.float32(margin) - x, 0.0)
        x2 = x * x
        h2 = h * h
        # y*x^2 + (1-y)*h^2 == h^2 + y*(x^2 - h^2)   (2 fewer multiplies)
        elem = h2 + y * (x2 - h2)

        def accumulate(e):
            # (block_rows,128) -> (block_rows/8, 8, 128) is tile-aligned
            # (free); reducing axis 0 is pure cross-vreg VALU adds into the
            # resident (8,128) accumulator.
            acc_ref[...] += jnp.sum(
                e.reshape(block_rows // _SUBLANES, _SUBLANES, _LANES), axis=0)

        if tail_rows == block_rows:
            # rows divide evenly into blocks: no mask anywhere.
            accumulate(elem)
        else:
            # Only the final (ragged) block pays for a row mask.
            @pl.when(j_global != num_blocks - 1)
            def _full():
                accumulate(elem)

            @pl.when(j_global == num_blocks - 1)
            def _ragged():
                row = jax.lax.broadcasted_iota(
                    jnp.int32, (block_rows, _LANES), 0)
                accumulate(jnp.where(row < tail_rows, elem, 0.0))

    if oob_gate:
        # Splits may own one block index past the end; skip it (its DMA index
        # is clamped in the index_map, so the read stays in bounds).
        pl.when(j_global < num_blocks)(body)
    else:
        body()


def _reference(out_put, label, margin=2.0):
    x = jnp.squeeze(out_put).astype(jnp.float32)
    y = jnp.squeeze(label).astype(jnp.float32)
    h = jnp.maximum(jnp.float32(margin) - x, 0.0)
    return jnp.mean(y * x * x + (1.0 - y) * h * h)


def contrastive_loss(out_put, label, margin=2.0, *, block_rows=4096,
                     num_splits=2, small_n_threshold=65536):
    """JAX/Pallas equivalent of ContrastiveLoss(margin).forward(out_put, label)."""
    x = jnp.squeeze(out_put)
    y = jnp.squeeze(label)
    n = int(x.size)

    if n == 0:
        # torch.mean of an empty tensor is NaN.
        return jnp.float32(float("nan"))

    # Small inputs (mmdet's per-batch scalars): plain XLA is strictly faster
    # than pad/reshape + a kernel launch.
    if n < max(int(small_n_threshold), _ROW_MULT * _LANES):
        return _reference(x, y, margin)

    # ---------------- Pallas streaming path ----------------
    xf = x.reshape(-1)
    yf = y.reshape(-1)
    pad = (-n) % _LANES
    if pad:
        # Pad only to the next lane multiple (NOT to a block multiple).  Each
        # padded zero contributes exactly max(margin,0)^2 and is corrected
        # analytically below -> no in-kernel lane mask.
        xf = jnp.pad(xf, (0, pad))
        yf = jnp.pad(yf, (0, pad))
    rows = (n + pad) // _LANES
    xf = xf.reshape(rows, _LANES)
    yf = yf.reshape(rows, _LANES)

    block_rows = max(_ROW_MULT, (int(block_rows) // _ROW_MULT) * _ROW_MULT)
    tr = max(_ROW_MULT, min(block_rows, (rows // _ROW_MULT) * _ROW_MULT))
    num_blocks = pl.cdiv(rows, tr)
    tail_rows = rows - (num_blocks - 1) * tr       # valid rows in last block

    num_splits = max(1, min(int(num_splits), int(num_blocks)))
    blocks_per_split = pl.cdiv(num_blocks, num_splits)
    oob_gate = num_splits * blocks_per_split > num_blocks

    kernel = functools.partial(
        _contrastive_loss_kernel,
        margin=float(margin), num_blocks=int(num_blocks),
        blocks_per_split=int(blocks_per_split), block_rows=int(tr),
        tail_rows=int(tail_rows), oob_gate=bool(oob_gate))

    def in_map(c, j):
        jg = c * blocks_per_split + j
        return (jnp.minimum(jg, num_blocks - 1), 0)

    partials = pl.pallas_call(
        kernel,
        out_shape=jax.ShapeDtypeStruct((num_splits * _SUBLANES, _LANES),
                                       jnp.float32),
        grid=(num_splits, blocks_per_split),
        in_specs=[
            pl.BlockSpec((tr, _LANES), in_map),
            pl.BlockSpec((tr, _LANES), in_map),
        ],
        out_specs=pl.BlockSpec((_SUBLANES, _LANES), lambda c, j: (c, 0)),
        compiler_params=pltpu.CompilerParams(
            dimension_semantics=("parallel", "arbitrary")),
    )(xf, yf)

    total = jnp.sum(partials)
    # Analytic correction for the lane padding: each padded element added
    # clamp(margin - 0, min=0)^2 == max(margin, 0)^2.
    total = total - jnp.float32(pad * max(float(margin), 0.0) ** 2)
    return total / jnp.float32(n)


if __name__ == "__main__":
    key = jax.random.PRNGKey(0)
    k1, k2, k3, k4, k5, k6 = jax.random.split(key, 6)
    margin = 2.0  # module default

    # Case 1: module-typical tiny input (batch of per-pair distances) ->
    # small-N fast path.
    out_s = jax.random.uniform(k1, (8, 1), dtype=jnp.float32) * 3.0
    lab_s = jax.random.bernoulli(k2, 0.5, (8, 1)).astype(jnp.float32)
    loss_s = jax.block_until_ready(contrastive_loss(out_s, lab_s, margin))
    ref_s = jax.block_until_ready(_reference(out_s, lab_s, margin))
    assert jnp.allclose(loss_s, ref_s, rtol=1e-5, atol=1e-5), (loss_s, ref_s)

    # Case 2: lane-aligned input -> Pallas path, no pad, no ragged tail.
    # Labels streamed narrow (bf16) and cast to f32 in-kernel.
    out_a = jax.random.uniform(k3, (640, 128), dtype=jnp.float32) * 3.0
    lab_a = jax.random.bernoulli(k4, 0.5, (640, 128)).astype(jnp.bfloat16)
    loss_a = jax.block_until_ready(contrastive_loss(out_a, lab_a, margin))
    ref_a = jax.block_until_ready(_reference(out_a, lab_a, margin))
    assert jnp.allclose(loss_a, ref_a, rtol=1e-5, atol=1e-5), (loss_a, ref_a)

    # Case 3: ragged size (not a multiple of 128) -> Pallas path with lane-pad
    # analytic correction plus the last-block row mask.
    out_b = jax.random.uniform(k5, (517, 159), dtype=jnp.float32) * 3.0
    lab_b = jax.random.bernoulli(k6, 0.5, (517, 159)).astype(jnp.float32)
    loss_b = jax.block_until_ready(contrastive_loss(out_b, lab_b, margin))
    ref_b = jax.block_until_ready(_reference(out_b, lab_b, margin))
    assert jnp.allclose(loss_b, ref_b, rtol=1e-5, atol=1e-5), (loss_b, ref_b)

    # Case 4: same ragged data with a small block size -> exercises multiple
    # row-blocks per split and the clamped/gated out-of-range split block.
    loss_c = jax.block_until_ready(
        contrastive_loss(out_b, lab_b, margin, block_rows=64))
    assert jnp.allclose(loss_c, ref_b, rtol=1e-5, atol=1e-5), (loss_c, ref_b)

    print("KERNEL_OK")
</pallas_src>

<mosaic_0001>
module attributes {stable_mosaic.version = 11 : i64} {
  func.func @_contrastive_loss_kernel(%arg0: i32, %arg1: i32, %arg2: memref<640x128xf32, #tpu.memory_space<vmem>>, %arg3: memref<640x128xbf16, #tpu.memory_space<vmem>>, %arg4: memref<8x128xf32, #tpu.memory_space<vmem>>) attributes {dimension_semantics = [#tpu.dimension_semantics<parallel>, #tpu.dimension_semantics<arbitrary>], iteration_bounds = array<i64: 1, 1>, scalar_prefetch = 0 : i64, scratch_operands = 0 : i64, tpu.core_type = #tpu.core_type<tc>, window_params = [{transform_indices = @transform_0, window_bounds = array<i64: 640, 128>}, {transform_indices = @transform_1, window_bounds = array<i64: 640, 128>}, {transform_indices = @transform_2, window_bounds = array<i64: 8, 128>}]} {
    %c0_i32 = arith.constant 0 : i32
    %0 = arith.cmpi eq, %arg1, %c0_i32 : i32
    %1 = arith.extui %0 : i1 to i32
    %c0_i32_0 = arith.constant 0 : i32
    %2 = arith.cmpi ne, %1, %c0_i32_0 : i32
    scf.if %2 {
      %cst_10 = arith.constant 0.000000e+00 : f32
      %20 = vector.broadcast %cst_10 : f32 to vector<8x128xf32>
      %c0_11 = arith.constant 0 : index
      %c0_12 = arith.constant 0 : index
      %21 = vector.load %arg4[%c0_11, %c0_12] : memref<8x128xf32, #tpu.memory_space<vmem>>, vector<8x128xf32>
      tpu.vector_store %arg4[%c0_11, %c0_12], %20 {strides = array<i32>} : memref<8x128xf32, #tpu.memory_space<vmem>>, vector<8x128xf32>,
    } else {
    }
    %c0 = arith.constant 0 : index
    %c0_1 = arith.constant 0 : index
    %3 = vector.load %arg2[%c0, %c0_1] : memref<640x128xf32, #tpu.memory_space<vmem>>, vector<640x128xf32>
    %c0_2 = arith.constant 0 : index
    %c0_3 = arith.constant 0 : index
    %4 = vector.load %arg3[%c0_2, %c0_3] : memref<640x128xbf16, #tpu.memory_space<vmem>>, vector<640x128xbf16>
    %5 = arith.extf %4 : vector<640x128xbf16> to vector<640x128xf32>
    %cst = arith.constant 2.000000e+00 : f32
    %6 = vector.broadcast %cst : f32 to vector<640x128xf32>
    %7 = arith.subf %6, %3 : vector<640x128xf32>
    %cst_4 = arith.constant 0.000000e+00 : f32
    %8 = vector.broadcast %cst_4 : f32 to vector<640x128xf32>
    %9 = arith.maximumf %7, %8 : vector<640x128xf32>
    %10 = arith.mulf %3, %3 : vector<640x128xf32>
    %11 = arith.mulf %9, %9 : vector<640x128xf32>
    %12 = arith.subf %10, %11 : vector<640x128xf32>
    %13 = arith.mulf %5, %12 : vector<640x128xf32>
    %14 = arith.addf %11, %13 : vector<640x128xf32>
    %c0_5 = arith.constant 0 : index
    %c0_6 = arith.constant 0 : index
    %15 = vector.load %arg4[%c0_5, %c0_6] : memref<8x128xf32, #tpu.memory_space<vmem>>, vector<8x128xf32>
    %16 = vector.shape_cast %14 : vector<640x128xf32> to vector<80x8x128xf32>
    %cst_7 = arith.constant dense<0.000000e+00> : vector<8x128xf32>
    %17 = vector.multi_reduction <add>, %16, %cst_7 [0] : vector<80x8x128xf32> to vector<8x128xf32>
    %18 = arith.addf %15, %17 : vector<8x128xf32>
    %c0_8 = arith.constant 0 : index
    %c0_9 = arith.constant 0 : index
    %19 = vector.load %arg4[%c0_8, %c0_9] : memref<8x128xf32, #tpu.memory_space<vmem>>, vector<8x128xf32>
    tpu.vector_store %arg4[%c0_8, %c0_9], %18 {strides = array<i32>} : memref<8x128xf32, #tpu.memory_space<vmem>>, vector<8x128xf32>,
    return
  }
  func.func @transform_0(%arg0: i32, %arg1: i32) -> (i32, i32) {
    %c1_i32 = arith.constant 1 : i32
    %0 = arith.muli %arg0, %c1_i32 : i32
    %1 = arith.addi %0, %arg1 : i32
    %c0_i32 = arith.constant 0 : i32
    %2 = arith.minsi %1, %c0_i32 : i32
    %c0_i32_0 = arith.constant 0 : i32
    %c0_i32_1 = arith.constant 0 : i32
    return %2, %c0_i32_0 : i32, i32
  }
  func.func @transform_1(%arg0: i32, %arg1: i32) -> (i32, i32) {
    %c1_i32 = arith.constant 1 : i32
    %0 = arith.muli %arg0, %c1_i32 : i32
    %1 = arith.addi %0, %arg1 : i32
    %c0_i32 = arith.constant 0 : i32
    %2 = arith.minsi %1, %c0_i32 : i32
    %c0_i32_0 = arith.constant 0 : i32
    %c0_i32_1 = arith.constant 0 : i32
    return %2, %c0_i32_0 : i32, i32
  }
  func.func @transform_2(%arg0: i32, %arg1: i32) -> (i32, i32) {
    %c0_i32 = arith.constant 0 : i32
    %c0_i32_0 = arith.constant 0 : i32
    return %arg0, %c0_i32 : i32, i32
  }
}

</mosaic_0001>

<bundles_post_ra>
// kernel: tpu_custom_call.1
= control target key start
LH: loop header
LB: loop body
LE: loop exit
PB: predicated region body
PF: predicated region fallthrough
CT: control target
= control target key end

     0   :  { %7 = vsyncpa [#allocation3], 0  ;;  %s1932_s0 = inlined_call_operand.hbm [shape: f32[640,128], index: 0, kind: input, shape index: {}]   ;;  %s1933_s1 = inlined_call_operand.hbm [shape: bf16[640,128], index: 1, kind: input, shape index: {}]   ;;  %s1934_s2 = inlined_call_operand.hbm [shape: f32[8,128], index: 2, kind: output, shape index: {}]  }
   0x1   :  { %8 = vsyncpa [#allocation6], 0 }
   0x2   :  { %9 = vsyncpa [#allocation4], 0  ;;  %s1253_s9 = smov [#allocation2]   ;;  %s1181_s13 = scalar_lea.hbm %s1932_s0, 10240 }
   0x3   :  { %s21_s10 = sshll.u32 %s1253_s9, 4  ;;  %p1182_p0 = scmp.ne.s32.totalorder %s1932_s0, %s1181_s13  ;;  %s22_s10 = int_to_ptr.vmem [resolvable:$true] %s21_s10 }
   0x4   :  { %p1185_p1 = scmp.lt.u32.totalorder %s1181_s13, %s1932_s0 }
   0x6   :  { %p1187_p2 = pnand %p1185_p1, %p1182_p0 }
   0x8   :  { %1190 = shalt.err (!%p1187_p2)
}
   0x9   :  { %s1191_s18 = scalar_lea.vmem %s22_s10, 10240  ;;  %p1196_p4 = scmp.lt.s32.totalorder %s22_s10, %s22_s10 }
   0xa   :  { %p1192_p3 = scmp.ne.s32.totalorder %s22_s10, %s1191_s18  ;;  %p1197_p5 = scmp.lt.s32.totalorder %s1191_s18, %s1191_s18 }
   0xc   :  { %p1198_p6 = por %p1197_p5, %p1196_p4 }
   0xe   :  { %p1199_p7 = pnand %p1198_p6, %p1192_p3 }
  0x10   :  { %1202 = shalt.err (!%p1199_p7)
}
  0x11   :  { %s1254_s19 = smov 128   ;;  %s1255_s20 = smov 8  }
  0x12   :  { %27 = dma.hbm_to_vmem [thread:$0]  %s1932_s0, 10240, %s22_s10, [#allocation3], %s1254_s19, %s1254_s19, %s1255_s20  }
  0x13   :  { %s1256_s23 = smov [#allocation5]   ;;  %s1203_s27 = scalar_lea.hbm %s1933_s1, 5120 }
  0x14   :  { %s39_s24 = sshll.u32 %s1256_s23, 4  ;;  %p1204_p8 = scmp.ne.s32.totalorder %s1933_s1, %s1203_s27  ;;  %s40_s24 = int_to_ptr.vmem [resolvable:$true] %s39_s24 }
  0x15   :  { %p1207_p9 = scmp.lt.u32.totalorder %s1203_s27, %s1933_s1 }
  0x17   :  { %p1209_p10 = pnand %p1207_p9, %p1204_p8 }
  0x19   :  { %1212 = shalt.err (!%p1209_p10)
}
  0x1a   :  { %s1213_s4 = scalar_lea.vmem %s40_s24, 5120  ;;  %p1218_p12 = scmp.lt.s32.totalorder %s40_s24, %s40_s24 }
  0x1b   :  { %p1214_p11 = scmp.ne.s32.totalorder %s40_s24, %s1213_s4  ;;  %p1219_p13 = scmp.lt.s32.totalorder %s1213_s4, %s1213_s4 }
  0x1d   :  { %p1220_p0 = por %p1219_p13, %p1218_p12 }
  0x1f   :  { %p1221_p1 = pnand %p1220_p0, %p1214_p11 }
  0x21   :  { %1224 = shalt.err (!%p1221_p1)
}
  0x22   :  { %s1257_s0 = smov 64   ;;  %s1258_s5 = smov 4  }
  0x23   :  { %45 = dma.hbm_to_vmem [thread:$0]  %s1933_s1, 5120, %s40_s24, [#allocation6], %s1257_s0, %s1257_s0, %s1258_s5  }
  0x24   :  { %1247 = dma.done.wait [#allocation3], 10240  }
  0x25   :  { %1248 = vsyncadd [#allocation3], 4294957056 }
  0x26   :  { %1249 = dma.done.wait [#allocation6], 5120  }
  0x27   :  { %1250 = vsyncadd [#allocation6], 4294962176  ;;  %v1299_v0 = vld [vmem:[#allocation2] sm:$0xff]  ;;  %v1301_v1 = vld [vmem:[#allocation2 + $0x8] sm:$0xff]  ;;  %s1259_s1 = smov [#allocation7]  }
  0x28   :  { %v1303_v2 = vld [vmem:[#allocation2 + $0x10] sm:$0xff]  ;;  %v1305_v3 = vld [vmem:[#allocation2 + $0x18] sm:$0xff]  ;;  %v1307_v4 = vld [vmem:[#allocation2 + $0x20] sm:$0xff]  ;;  %v1337_v21 = vmul.f32 %v1299_v0, %v1299_v0  ;;  %v1350_v28 = vmul.f32 %v1301_v1, %v1301_v1  ;;  %v2043_v12 = vsub.f32 2.0, %v1301_v1  ;;  %s953_s8 = sshll.u32 %s1259_s1, 4  ;;  %s954_s8 = int_to_ptr.vmem [resolvable:$true] %s953_s8 }
  0x29   :  { %v1309_v5 = vld [vmem:[#allocation2 + $0x28] sm:$0xff]  ;;  %v1311_v6 = vld [vmem:[#allocation2 + $0x30] sm:$0xff]  ;;  %v1313_v7 = vld [vmem:[#allocation2 + $0x38] sm:$0xff]  ;;  %v1363_v35 = vmul.f32 %v1303_v2, %v1303_v2  ;;  %v1376_v42 = vmul.f32 %v1305_v3, %v1305_v3  ;;  %v1389_v49 = vmul.f32 %v1307_v4, %v1307_v4  ;;  %s1225_s9 = scalar_lea.vmem %s954_s8, 128  ;;  %p1230_p3 = scmp.lt.s32.totalorder %s954_s8, %s954_s8 }
  0x2a   :  { %v1315_v8 = vld [vmem:[#allocation2 + $0x40] sm:$0xff]  ;;  %v1317_v9 = vld [vmem:[#allocation2 + $0x48] sm:$0xff]  ;;  %v1319_v10 = vld [vmem:[#allocation2 + $0x50] sm:$0xff]  ;;  %v1402_v56 = vmul.f32 %v1309_v5, %v1309_v5  ;;  %v1415_v63 = vmul.f32 %v1311_v6, %v1311_v6  ;;  %v1428_v61 = vmul.f32 %v1313_v7, %v1313_v7  ;;  %p1226_p2 = scmp.ne.s32.totalorder %s954_s8, %s1225_s9  ;;  %p1231_p4 = scmp.lt.s32.totalorder %s1225_s9, %s1225_s9 }
  0x2b   :  { %v1321_v11 = vld [vmem:[#allocation2 + $0x58] sm:$0xff]  ;;  %v1326_v15 = vld [vmem:[#allocation2 + $0x60] sm:$0xff]  ;;  %v1328_v16 = vld [vmem:[#allocation2 + $0x68] sm:$0xff]  ;;  %v1441_v47 = vmul.f32 %v1315_v8, %v1315_v8  ;;  %v1454_v39 = vmul.f32 %v1317_v9, %v1317_v9  ;;  %v1463_v19 = vmul.f32 %v1319_v10, %v1319_v10 }
  0x2c   :  { %v1330_v17 = vld [vmem:[#allocation2 + $0x70] sm:$0xff]  ;;  %v1339_v22 = vld [vmem:[#allocation2 + $0x78] sm:$0xff]  ;;  %v1341_v23 = vld [vmem:[#allocation2 + $0x80] sm:$0xff]  ;;  %v1476_v25 = vmul.f32 %v1321_v11, %v1321_v11  ;;  %v1487_v18 = vmul.f32 %v1326_v15, %v1326_v15  ;;  %p1232_p5 = por %p1231_p4, %p1230_p3 }
  0x2d   :  { %v1343_v24 = vld [vmem:[#allocation2 + $0x88] sm:$0xff]  ;;  %v1352_v29 = vld [vmem:[#allocation2 + $0x90] sm:$0xff]  ;;  %v1354_v30 = vld [vmem:[#allocation2 + $0x98] sm:$0xff] }
  0x2e   :  { %v1356_v31 = vld [vmem:[#allocation2 + $0xa0] sm:$0xff]  ;;  %v1365_v36 = vld [vmem:[#allocation2 + $0xa8] sm:$0xff]  ;;  %v1367_v37 = vld [vmem:[#allocation2 + $0xb0] sm:$0xff]  ;;  %p1233_p6 = pnand %p1232_p5, %p1226_p2 }
  0x2f   :  { %v1369_v38 = vld [vmem:[#allocation2 + $0xb8] sm:$0xff]  ;;  %v1378_v43 = vld [vmem:[#allocation2 + $0xc0] sm:$0xff]  ;;  %v1380_v44 = vld [vmem:[#allocation2 + $0xc8] sm:$0xff] }
  0x30   :  { %2015 = vst [vmem:[#allocation11_spill] sm:$0xff] %v1378_v43  ;;  %2016 = vst [vmem:[#allocation12_spill] sm:$0xff] %v1380_v44  ;;  %v1382_v45 = vld [vmem:[#allocation2 + $0xd0] sm:$0xff]  ;;  %v1391_v50 = vld [vmem:[#allocation2 + $0xd8] sm:$0xff] }
  0x31   :  { %2017 = vst [vmem:[#allocation13_spill] sm:$0xff] %v1382_v45  ;;  %2018 = vst [vmem:[#allocation14_spill] sm:$0xff] %v1391_v50  ;;  %v1393_v51 = vld [vmem:[#allocation2 + $0xe0] sm:$0xff]  ;;  %v1395_v52 = vld [vmem:[#allocation2 + $0xe8] sm:$0xff] }
  0x32   :  { %2019 = vst [vmem:[#allocation15_spill] sm:$0xff] %v1393_v51  ;;  %2020 = vst [vmem:[#allocation16_spill] sm:$0xff] %v1395_v52  ;;  %v1404_v57 = vld [vmem:[#allocation2 + $0xf0] sm:$0xff]  ;;  %v1406_v58 = vld [vmem:[#allocation2 + $0xf8] sm:$0xff] }
  0x33   :  { %2021 = vst [vmem:[#allocation17_spill] sm:$0xff] %v1404_v57  ;;  %2022 = vst [vmem:[#allocation18_spill] sm:$0xff] %v1406_v58  ;;  %v1408_v59 = vld [vmem:[#allocation2 + $0x100] sm:$0xff]  ;;  %v1417_v55 = vld [vmem:[#allocation2 + $0x108] sm:$0xff] }
  0x34   :  { %2023 = vst [vmem:[#allocation19_spill] sm:$0xff] %v1408_v59  ;;  %2024 = vst [vmem:[#allocation20_spill] sm:$0xff] %v1417_v55  ;;  %v1419_v54 = vld [vmem:[#allocation2 + $0x110] sm:$0xff]  ;;  %v1421_v53 = vld [vmem:[#allocation2 + $0x118] sm:$0xff]  ;;  %v1525_v59 = vmul.f32 %v1339_v22, %v1339_v22 }
  0x35   :  { %2025 = vst [vmem:[#allocation21_spill] sm:$0xff] %v1419_v54  ;;  %2026 = vst [vmem:[#allocation22_spill] sm:$0xff] %v1421_v53  ;;  %v1430_v62 = vld [vmem:[#allocation2 + $0x120] sm:$0xff]  ;;  %v1432_v46 = vld [vmem:[#allocation2 + $0x128] sm:$0xff]  ;;  %v386_v53 = vmax.f32 %v2043_v12, 0.0  ;;  %v1502_v54 = vmul.f32 %v1328_v16, %v1328_v16 }
  0x36   :  { %2027 = vst [vmem:[#allocation23_spill] sm:$0xff] %v1430_v62  ;;  %2028 = vst [vmem:[#allocation24_spill] sm:$0xff] %v1432_v46  ;;  %v1434_v41 = vld [vmem:[#allocation2 + $0x130] sm:$0xff]  ;;  %v1443_v60 = vld [vmem:[#allocation2 + $0x138] sm:$0xff]  ;;  %v2042_v62 = vsub.f32 2.0, %v1299_v0  ;;  %v1511_v46 = vmul.f32 %v1330_v17, %v1330_v17 }
  0x37   :  { %2029 = vst [vmem:[#allocation25_spill] sm:$0xff] %v1434_v41  ;;  %2030 = vst [vmem:[#allocation26_spill] sm:$0xff] %v1443_v60  ;;  %v1445_v34 = vld [vmem:[#allocation2 + $0x140] sm:$0xff]  ;;  %v1447_v33 = vld [vmem:[#allocation2 + $0x148] sm:$0xff]  ;;  %v546_v51 = vmul.f32 %v386_v53, %v386_v53  ;;  %v2057_v53 = vsub.f32 2.0, %v1307_v4 }
  0x38   :  { %2031 = vst [vmem:[#allocation27_spill] sm:$0xff] %v1445_v34  ;;  %2032 = vst [vmem:[#allocation28_spill] sm:$0xff] %v1447_v33  ;;  %v1456_v48 = vld [vmem:[#allocation2 + $0x150] sm:$0xff]  ;;  %v1465_v32 = vld [vmem:[#allocation2 + $0x158] sm:$0xff]  ;;  %v385_v55 = vmax.f32 %v2042_v62, 0.0  ;;  %v2048_v34 = vsub.f32 2.0, %v1303_v2 }
  0x39   :  { %2033 = vst [vmem:[#allocation29_spill] sm:$0xff] %v1456_v48  ;;  %2034 = vst [vmem:[#allocation30_spill] sm:$0xff] %v1465_v32  ;;  %v1467_v27 = vld [vmem:[#allocation2 + $0x160] sm:$0xff]  ;;  %v1469_v40 = vld [vmem:[#allocation2 + $0x168] sm:$0xff]  ;;  %v1536_v48 = vmul.f32 %v1341_v23, %v1341_v23 }
  0x3a   :  { %2035 = vst [vmem:[#allocation31_spill] sm:$0xff] %v1467_v27  ;;  %2036 = vst [vmem:[#allocation32_spill] sm:$0xff] %v1469_v40  ;;  %v1478_v20 = vld [vmem:[#allocation2 + $0x170] sm:$0xff]  ;;  %v1480_v13 = vld [vmem:[#allocation2 + $0x178] sm:$0xff]  ;;  %v387_v32 = vmax.f32 %v2048_v34, 0.0  ;;  %v545_v52 = vmul.f32 %v385_v55, %v385_v55  ;;  %v389_v55 = vmax.f32 %v2057_v53, 0.0 }
  0x3b   :  { %2037 = vst [vmem:[#allocation33_spill] sm:$0xff] %v1478_v20  ;;  %2038 = vst [vmem:[#allocation34_spill] sm:$0xff] %v1480_v13  ;;  %v1489_v14 = vld [vmem:[#allocation2 + $0x180] sm:$0xff]  ;;  %v1491_v26 = vld [vmem:[#allocation2 + $0x188] sm:$0xff]  ;;  %v2052_v13 = vsub.f32 2.0, %v1305_v3  ;;  %v2061_v3 = vsub.f32 2.0, %v1309_v5 }
  0x3c   :  { %2039 = vst [vmem:[#allocation35_spill] sm:$0xff] %v1489_v14  ;;  %2040 = vst [vmem:[#allocation36_spill] sm:$0xff] %v1491_v26  ;;  %v1493_v41 = vld [vmem:[#allocation2 + $0x190] sm:$0xff]  ;;  %v1504_v33 = vld [vmem:[#allocation2 + $0x198] sm:$0xff]  ;;  %v547_v58 = vmul.f32 %v387_v32, %v387_v32  ;;  %v625_v4 = vsub.f32 %v1337_v21, %v545_v52  ;;  %v626_v32 = vsub.f32 %v1350_v28, %v546_v51  ;;  %v2065_v21 = vsub.f32 2.0, %v1311_v6 }
  0x3d   :  { %2041 = vst [vmem:[#allocation37_spill] sm:$0xff] %v1493_v41  ;;  %2044 = vst [vmem:[#allocation38_spill] sm:$0xff] %v1504_v33  ;;  %v1513_v0 = vld [vmem:[#allocation2 + $0x1a0] sm:$0xff]  ;;  %v1515_v1 = vld [vmem:[#allocation2 + $0x1a8] sm:$0xff]  ;;  %v388_v20 = vmax.f32 %v2052_v13, 0.0  ;;  %v1548_v41 = vmul.f32 %v1343_v24, %v1343_v24  ;;  %v390_v13 = vmax.f32 %v2061_v3, 0.0  ;;  %v549_v28 = vmul.f32 %v389_v55, %v389_v55 }
  0x3e   :  { %2045 = vst [vmem:[#allocation39_spill] sm:$0xff] %v1513_v0  ;;  %2046 = vst [vmem:[#allocation40_spill] sm:$0xff] %v1515_v1  ;;  %v1517_v12 = vld [vmem:[#allocation2 + $0x1b0] sm:$0xff]  ;;  %v1527_v60 = vld [vmem:[#allocation2 + $0x1b8] sm:$0xff]  ;;  %v1563_v0 = vmul.f32 %v1352_v29, %v1352_v29  ;;  %v391_v3 = vmax.f32 %v2065_v21, 0.0 }
  0x3f   :  { %2047 = vst [vmem:[#allocation41_spill] sm:$0xff] %v1517_v12  ;;  %2049 = vst [vmem:[#allocation42_spill] sm:$0xff] %v1527_v60  ;;  %v1529_v40 = vld [vmem:[#allocation2 + $0x1c0] sm:$0xff]  ;;  %v1538_v2 = vld [vmem:[#allocation2 + $0x1c8] sm:$0xff] }
  0x40   :  { %2050 = vst [vmem:[#allocation43_spill] sm:$0xff] %v1529_v40  ;;  %2051 = vst [vmem:[#allocation44_spill] sm:$0xff] %v1538_v2  ;;  %v968_v34 = vld [vmem:[#allocation5] sm:$0xff]   ;;  %v1550_v26 = vld [vmem:[#allocation2 + $0x1d0] sm:$0xff]  ;;  %v548_v40 = vmul.f32 %v388_v20, %v388_v20  ;;  %v1578_v2 = vmul.f32 %v1354_v30, %v1354_v30 }
  0x41   :  { %2053 = vst [vmem:[#allocation45_spill] sm:$0xff] %v1548_v41  ;;  %2054 = vst [vmem:[#allocation46_spill] sm:$0xff] %v1550_v26  ;;  %v1552_v14 = vld [vmem:[#allocation2 + $0x1d8] sm:$0xff]  ;;  %v1554_v62 = vld [vmem:[#allocation2 + $0x1e0] sm:$0xff]  ;;  %v969_v27 = vunpack.c.l.bf16 %v968_v34  ;;  %v970_v57 = vunpack.c.h.bf16 %v968_v34  ;;  %v627_v34 = vsub.f32 %v1363_v35, %v547_v58 }
  0x42   :  { %2055 = vst [vmem:[#allocation47_spill] sm:$0xff] %v1552_v14  ;;  %2056 = vst [vmem:[#allocation48_spill] sm:$0xff] %v1554_v62  ;;  %v1127_v12 = vld [vmem:[#allocation5 + $0x8] sm:$0xff]   ;;  %v1567_v50 = vld [vmem:[#allocation2 + $0x1f0] sm:$0xff]  ;;  %v2066_v62 = vsub.f32 2.0, %v1313_v7 }
  0x43   :  { %2058 = vst [vmem:[#allocation49_spill] sm:$0xff] %v1563_v0  ;;  %v1565_v33 = vld [vmem:[#allocation2 + $0x1e8] sm:$0xff]  ;;  %2060 = vst [vmem:[#allocation51_spill] sm:$0xff] %v1567_v50  ;;  %v1580_v60 = vld [vmem:[#allocation2 + $0x1f8] sm:$0xff]  ;;  %v973_v5 = vunpack.c.l.bf16 %v1127_v12  ;;  %v974_v26 = vunpack.c.h.bf16 %v1127_v12  ;;  %v628_v0 = vsub.f32 %v1376_v42, %v548_v40  ;;  %v705_v41 = vmul.f32 %v969_v27, %v625_v4 }
  0x44   :  { %2059 = vst [vmem:[#allocation50_spill] sm:$0xff] %v1565_v33  ;;  %2062 = vst [vmem:[#allocation52_spill] sm:$0xff] %v1578_v2  ;;  %v1582_v45 = vld [vmem:[#allocation2 + $0x200] sm:$0xff]  ;;  %v1128_v20 = vld [vmem:[#allocation5 + $0x10] sm:$0xff]   ;;  %v392_v14 = vmax.f32 %v2066_v62, 0.0  ;;  %v550_v2 = vmul.f32 %v390_v13, %v390_v13  ;;  %v706_v43 = vmul.f32 %v970_v57, %v626_v32  ;;  %v1598_v12 = vmul.f32 %v1356_v31, %v1356_v31 }
  0x45   :  { %2063 = vst [vmem:[#allocation53_spill] sm:$0xff] %v1580_v60  ;;  %2064 = vst [vmem:[#allocation54_spill] sm:$0xff] %v1582_v45  ;;  %v1591_v44 = vld [vmem:[#allocation2 + $0x208] sm:$0xff]  ;;  %v977_v6 = vunpack.c.l.bf16 %v1128_v20  ;;  %v1600_v21 = vld [vmem:[#allocation2 + $0x210] sm:$0xff]  ;;  %v2068_v62 = vsub.f32 2.0, %v1315_v8  ;;  %v551_v13 = vmul.f32 %v391_v3, %v391_v3  ;;  %v629_v42 = vsub.f32 %v1389_v49, %v549_v28 }
  0x46   :  { %2067 = vst [vmem:[#allocation55_spill] sm:$0xff] %v1600_v21  ;;  %v1129_v7 = vld [vmem:[#allocation5 + $0x18] sm:$0xff]   ;;  %v707_v27 = vmul.f32 %v973_v5, %v627_v34  ;;  %v978_v57 = vunpack.c.h.bf16 %v1128_v20  ;;  %v2069_v32 = vsub.f32 2.0, %v1317_v9  ;;  %v552_v55 = vmul.f32 %v392_v14, %v392_v14  ;;  %v1618_v9 = vld [vmem:[#allocation2 + $0x220] sm:$0xff] }
  0x47   :  { %v393_v1 = vmax.f32 %v2068_v62, 0.0  ;;  %v1608_v53 = vld [vmem:[#allocation2 + $0x218] sm:$0xff]  ;;  %v630_v45 = vsub.f32 %v1402_v56, %v550_v2  ;;  %v708_v60 = vmul.f32 %v974_v26, %v628_v0  ;;  %v785_v50 = vadd.f32 %v705_v41, %v545_v52  ;;  %v1130_v14 = vld [vmem:[#allocation5 + $0x20] sm:$0xff]  }
  0x48   :  { %v394_v35 = vmax.f32 %v2069_v32, 0.0  ;;  %v786_v33 = vadd.f32 %v706_v43, %v546_v51  ;;  %v981_v8 = vunpack.c.l.bf16 %v1129_v7  ;;  %v2070_v49 = vsub.f32 2.0, %v1319_v10 }
  0x49   :  { %v1616_v5 = vmul.f32 %v1365_v36, %v1365_v36  ;;  %v553_v20 = vmul.f32 %v393_v1, %v393_v1  ;;  %v631_v62 = vsub.f32 %v1415_v63, %v551_v13  ;;  %v709_v56 = vmul.f32 %v977_v6, %v629_v42 }
  0x4a   :  { %v395_v34 = vmax.f32 %v2070_v49, 0.0  ;;  %v787_v26 = vadd.f32 %v707_v27, %v547_v58  ;;  %v982_v41 = vunpack.c.h.bf16 %v1129_v7  ;;  %v372_v43 = vsub.f32 2.0, %v1608_v53  ;;  %v1628_v58 = vld [vmem:[#allocation2 + $0x228] sm:$0xff] }
  0x4b   :  { %v2071_v51 = vsub.f32 2.0, %v1321_v11  ;;  %v554_v10 = vmul.f32 %v394_v35, %v394_v35  ;;  %v632_v0 = vsub.f32 %v1428_v61, %v552_v55  ;;  %v710_v32 = vmul.f32 %v978_v57, %v630_v45  ;;  %v1131_v7 = vld [vmem:[#allocation5 + $0x28] sm:$0xff]  }
  0x4c   :  { %v788_v49 = vadd.f32 %v708_v60, %v548_v40  ;;  %v866_v3 = vadd.f32 %v786_v33, %v785_v50  ;;  %v985_v4 = vunpack.c.l.bf16 %v1130_v14  ;;  %v373_v21 = vsub.f32 2.0, %v1618_v9 }
  0x4d   :  { %v396_v52 = vmax.f32 %v2071_v51, 0.0  ;;  %v2072_v1 = vsub.f32 2.0, %v1326_v15  ;;  %v555_v6 = vmul.f32 %v395_v34, %v395_v34  ;;  %v633_v42 = vsub.f32 %v1441_v47, %v553_v20  ;;  %v1637_v15 = vld [vmem:[#allocation2 + $0x230] sm:$0xff] }
  0x4e   :  { %v711_v11 = vmul.f32 %v981_v8, %v631_v62  ;;  %v789_v27 = vadd.f32 %v709_v56, %v549_v28  ;;  %v867_v35 = vadd.f32 %v866_v3, %v787_v26  ;;  %v986_v51 = vunpack.c.h.bf16 %v1130_v14  ;;  %v1643_v14 = vld [vmem:[#allocation2 + $0x238] sm:$0xff]  ;;  %v1132_v62 = vld [vmem:[#allocation5 + $0x30] sm:$0xff]  }
  0x4f   :  { %v397_v63 = vmax.f32 %v2072_v1, 0.0  ;;  %v2073_v45 = vsub.f32 2.0, %v1328_v16  ;;  %v1635_v33 = vmul.f32 %v1367_v37, %v1367_v37  ;;  %v556_v50 = vmul.f32 %v396_v52, %v396_v52 }
  0x50   :  { %v634_v60 = vsub.f32 %v1454_v39, %v554_v10  ;;  %v712_v61 = vmul.f32 %v982_v41, %v632_v0  ;;  %v790_v57 = vadd.f32 %v710_v32, %v550_v2  ;;  %v868_v34 = vadd.f32 %v867_v35, %v788_v49 }
  0x51   :  { %v398_v40 = vmax.f32 %v2073_v45, 0.0  ;;  %v989_v47 = vunpack.c.l.bf16 %v1131_v7  ;;  %v374_v28 = vsub.f32 2.0, %v1628_v58  ;;  %v2074_v8 = vsub.f32 2.0, %v1330_v17 }
  0x52   :  { %v557_v16 = vmul.f32 %v397_v63, %v397_v63  ;;  %v635_v56 = vsub.f32 %v1463_v19, %v555_v6  ;;  %v713_v26 = vmul.f32 %v985_v4, %v633_v42  ;;  %v791_v52 = vadd.f32 %v711_v11, %v551_v13  ;;  %v1653_v42 = vld [vmem:[#allocation2 + $0x240] sm:$0xff] }
  0x53   :  { %v399_v3 = vmax.f32 %v2074_v8, 0.0  ;;  %v869_v1 = vadd.f32 %v868_v34, %v789_v27  ;;  %v990_v45 = vunpack.c.h.bf16 %v1131_v7  ;;  %v375_v39 = vsub.f32 2.0, %v1637_v15  ;;  %v1133_v7 = vld [vmem:[#allocation5 + $0x38] sm:$0xff]  }
  0x54   :  { %v2075_v2 = vsub.f32 2.0, %v1339_v22  ;;  %v558_v0 = vmul.f32 %v398_v40, %v398_v40  ;;  %v636_v32 = vsub.f32 %v1476_v25, %v556_v50  ;;  %v714_v17 = vmul.f32 %v986_v51, %v634_v60 }
  0x55   :  { %v792_v49 = vadd.f32 %v712_v61, %v552_v55  ;;  %v870_v63 = vadd.f32 %v869_v1, %v790_v57  ;;  %v993_v35 = vunpack.c.l.bf16 %v1132_v62  ;;  %v376_v8 = vsub.f32 2.0, %v1643_v14 }
  0x56   :  { %v400_v41 = vmax.f32 %v2075_v2, 0.0  ;;  %v2076_v19 = vsub.f32 2.0, %v1341_v23  ;;  %v559_v13 = vmul.f32 %v399_v3, %v399_v3  ;;  %v637_v11 = vsub.f32 %v1487_v18, %v557_v16  ;;  %v1662_v23 = vld [vmem:[#allocation2 + $0x248] sm:$0xff] }
  0x57   :  { %v715_v22 = vmul.f32 %v989_v47, %v635_v56  ;;  %v793_v27 = vadd.f32 %v713_v26, %v553_v20  ;;  %v871_v40 = vadd.f32 %v870_v63, %v791_v52  ;;  %v994_v34 = vunpack.c.h.bf16 %v1132_v62  ;;  %v1668_v56 = vld [vmem:[#allocation2 + $0x250] sm:$0xff]  ;;  %v1134_v26 = vld [vmem:[#allocation5 + $0x40] sm:$0xff]  }
  0x58   :  { %v401_v4 = vmax.f32 %v2076_v19, 0.0  ;;  %v2077_v25 = vsub.f32 2.0, %v1343_v24  ;;  %v1660_v51 = vmul.f32 %v1369_v38, %v1369_v38  ;;  %v560_v60 = vmul.f32 %v400_v41, %v400_v41 }
  0x59   :  { %v638_v61 = vsub.f32 %v1502_v54, %v558_v0  ;;  %v716_v57 = vmul.f32 %v990_v45, %v636_v32  ;;  %v794_v3 = vadd.f32 %v714_v17, %v554_v10  ;;  %v872_v1 = vadd.f32 %v871_v40, %v792_v49 }
  0x5a   :  { %v402_v55 = vmax.f32 %v2077_v25, 0.0  ;;  %v997_v18 = vunpack.c.l.bf16 %v1133_v7  ;;  %v377_v20 = vsub.f32 2.0, %v1653_v42  ;;  %v2078_v47 = vsub.f32 2.0, %v1352_v29 }
  0x5b   :  { %v561_v24 = vmul.f32 %v401_v4, %v401_v4  ;;  %v639_v52 = vsub.f32 %v1511_v46, %v559_v13  ;;  %v717_v2 = vmul.f32 %v993_v35, %v637_v11  ;;  %v795_v41 = vadd.f32 %v715_v22, %v555_v6  ;;  %v1678_v11 = vld [vmem:[#allocation2 + $0x258] sm:$0xff] }
  0x5c   :  { %v403_v62 = vmax.f32 %v2078_v47, 0.0  ;;  %v873_v63 = vadd.f32 %v872_v1, %v793_v27  ;;  %v998_v19 = vunpack.c.h.bf16 %v1133_v7  ;;  %v2079_v10 = vsub.f32 2.0, %v1354_v30  ;;  %v1135_v7 = vld [vmem:[#allocation5 + $0x48] sm:$0xff]  }
  0x5d   :  { %v562_v32 = vmul.f32 %v402_v55, %v402_v55  ;;  %v640_v17 = vsub.f32 %v1525_v59, %v560_v60  ;;  %v718_v29 = vmul.f32 %v994_v34, %v638_v61  ;;  %v796_v49 = vadd.f32 %v716_v57, %v556_v50  ;;  %v2082_v34 = vld [vmem:[#allocation11_spill] sm:$0xff] }
  0x5e   :  { %v404_v45 = vmax.f32 %v2079_v10, 0.0  ;;  %v874_v4 = vadd.f32 %v873_v63, %v794_v3  ;;  %v1001_v40 = vunpack.c.l.bf16 %v1134_v26  ;;  %v2080_v46 = vsub.f32 2.0, %v1356_v31  ;;  %v1687_v31 = vld [vmem:[#allocation2 + $0x260] sm:$0xff]  ;;  %v2083_v3 = vld [vmem:[#allocation45_spill] sm:$0xff] }
  0x5f   :  { %v563_v6 = vmul.f32 %v403_v62, %v403_v62  ;;  %v641_v22 = vsub.f32 %v1536_v48, %v561_v24  ;;  %v719_v30 = vmul.f32 %v997_v18, %v639_v52  ;;  %v797_v27 = vadd.f32 %v717_v2, %v557_v16  ;;  %v1693_v52 = vld [vmem:[#allocation2 + $0x268] sm:$0xff]  ;;  %v1136_v2 = vld [vmem:[#allocation5 + $0x50] sm:$0xff]  }
  0x60   :  { %v405_v35 = vmax.f32 %v2080_v46, 0.0  ;;  %v875_v55 = vadd.f32 %v874_v4, %v795_v41  ;;  %v1002_v1 = vunpack.c.h.bf16 %v1134_v26  ;;  %v2081_v59 = vsub.f32 2.0, %v1365_v36  ;;  %v2085_v41 = vld [vmem:[#allocation49_spill] sm:$0xff] }
  0x61   :  { %v1685_v61 = vmul.f32 %v2082_v34, %v2082_v34  ;;  %v564_v57 = vmul.f32 %v404_v45, %v404_v45  ;;  %v642_v47 = vsub.f32 %v2083_v3, %v562_v32  ;;  %v720_v62 = vmul.f32 %v998_v19, %v640_v17 }
  0x62   :  { %v406_v50 = vmax.f32 %v2081_v59, 0.0  ;;  %v798_v63 = vadd.f32 %v718_v29, %v558_v0  ;;  %v876_v10 = vadd.f32 %v875_v55, %v796_v49  ;;  %v1005_v48 = vunpack.c.l.bf16 %v1135_v7  ;;  %v2087_v49 = vld [vmem:[#allocation52_spill] sm:$0xff] }
  0x63   :  { %v2084_v18 = vsub.f32 2.0, %v1367_v37  ;;  %v565_v36 = vmul.f32 %v405_v35, %v405_v35  ;;  %v643_v4 = vsub.f32 %v2085_v41, %v563_v6  ;;  %v721_v45 = vmul.f32 %v1001_v40, %v641_v22  ;;  %v1703_v22 = vld [vmem:[#allocation2 + $0x270] sm:$0xff] }
  0x64   :  { %v799_v46 = vadd.f32 %v719_v30, %v559_v13  ;;  %v877_v59 = vadd.f32 %v876_v10, %v797_v27  ;;  %v1006_v25 = vunpack.c.h.bf16 %v1135_v7  ;;  %v2086_v0 = vsub.f32 2.0, %v1369_v38  ;;  %v1137_v7 = vld [vmem:[#allocation5 + $0x58] sm:$0xff]  }
  0x65   :  { %v407_v26 = vmax.f32 %v2084_v18, 0.0  ;;  %v566_v29 = vmul.f32 %v406_v50, %v406_v50  ;;  %v644_v55 = vsub.f32 %v2087_v49, %v564_v57  ;;  %v722_v37 = vmul.f32 %v1002_v1, %v642_v47 }
  0x66   :  { %v408_v17 = vmax.f32 %v2086_v0, 0.0  ;;  %v800_v3 = vadd.f32 %v720_v62, %v560_v60  ;;  %v878_v35 = vadd.f32 %v877_v59, %v798_v63  ;;  %v1009_v18 = vunpack.c.l.bf16 %v1136_v2  ;;  %v2089_v0 = vld [vmem:[#allocation12_spill] sm:$0xff]  ;;  %v1710_v63 = vld [vmem:[#allocation2 + $0x278] sm:$0xff] }
  0x67   :  { %v2088_v41 = vsub.f32 2.0, %v2082_v34  ;;  %v567_v13 = vmul.f32 %v407_v26, %v407_v26  ;;  %v645_v30 = vsub.f32 %v1598_v12, %v565_v36  ;;  %v723_v38 = vmul.f32 %v1005_v48, %v643_v4 }
  0x68   :  { %v801_v27 = vadd.f32 %v721_v45, %v561_v24  ;;  %v879_v50 = vadd.f32 %v878_v35, %v799_v46  ;;  %v1010_v10 = vunpack.c.h.bf16 %v1136_v2  ;;  %v2090_v1 = vsub.f32 2.0, %v2089_v0  ;;  %v2091_v24 = vld [vmem:[#allocation13_spill] sm:$0xff]  ;;  %v1138_v45 = vld [vmem:[#allocation5 + $0x60] sm:$0xff]  }
  0x69   :  { %v409_v40 = vmax.f32 %v2088_v41, 0.0  ;;  %v490_v47 = vmul.f32 %v2089_v0, %v2089_v0  ;;  %v568_v62 = vmul.f32 %v408_v17, %v408_v17  ;;  %v646_v34 = vsub.f32 %v1616_v5, %v566_v29  ;;  %v2093_v5 = vld [vmem:[#allocation14_spill] sm:$0xff] }
  0x6a   :  { %v410_v60 = vmax.f32 %v2090_v1, 0.0  ;;  %v724_v26 = vmul.f32 %v1006_v25, %v644_v55  ;;  %v802_v59 = vadd.f32 %v722_v37, %v562_v32  ;;  %v880_v49 = vadd.f32 %v879_v50, %v800_v3 }
  0x6b   :  { %v1013_v41 = vunpack.c.l.bf16 %v1137_v7  ;;  %v2092_v48 = vsub.f32 2.0, %v2091_v24  ;;  %v569_v4 = vmul.f32 %v409_v40, %v409_v40  ;;  %v647_v46 = vsub.f32 %v1635_v33, %v567_v13  ;;  %v2095_v40 = vld [vmem:[#allocation15_spill] sm:$0xff] }
  0x6c   :  { %v725_v35 = vmul.f32 %v1009_v18, %v645_v30  ;;  %v803_v0 = vadd.f32 %v723_v38, %v563_v6  ;;  %v881_v17 = vadd.f32 %v880_v49, %v801_v27  ;;  %v1014_v1 = vunpack.c.h.bf16 %v1137_v7  ;;  %v1139_v18 = vld [vmem:[#allocation5 + $0x68] sm:$0xff]   ;;  %v2097_v49 = vld [vmem:[#allocation16_spill] sm:$0xff] }
  0x6d   :  { %v411_v2 = vmax.f32 %v2092_v48, 0.0  ;;  %v2094_v25 = vsub.f32 2.0, %v2093_v5  ;;  %v570_v55 = vmul.f32 %v410_v60, %v410_v60  ;;  %v648_v37 = vsub.f32 %v1660_v51, %v568_v62 }
  0x6e   :  { %v726_v3 = vmul.f32 %v1010_v10, %v646_v34  ;;  %v804_v50 = vadd.f32 %v724_v26, %v564_v57  ;;  %v882_v12 = vadd.f32 %v881_v17, %v802_v59  ;;  %v1017_v48 = vunpack.c.l.bf16 %v1138_v45 }
  0x6f   :  { %v412_v32 = vmax.f32 %v2094_v25, 0.0  ;;  %v2096_v19 = vsub.f32 2.0, %v2095_v40  ;;  %v491_v33 = vmul.f32 %v2091_v24, %v2091_v24  ;;  %v571_v6 = vmul.f32 %v411_v2, %v411_v2  ;;  %v2099_v2 = vld [vmem:[#allocation17_spill] sm:$0xff] }
  0x70   :  { %v649_v7 = vsub.f32 %v1685_v61, %v569_v4  ;;  %v727_v30 = vmul.f32 %v1013_v41, %v647_v46  ;;  %v805_v38 = vadd.f32 %v725_v35, %v565_v36  ;;  %v883_v27 = vadd.f32 %v882_v12, %v803_v0  ;;  %v1140_v41 = vld [vmem:[#allocation5 + $0x70] sm:$0xff]  }
  0x71   :  { %v413_v54 = vmax.f32 %v2096_v19, 0.0  ;;  %v1018_v60 = vunpack.c.h.bf16 %v1138_v45  ;;  %v2098_v51 = vsub.f32 2.0, %v2097_v49  ;;  %v492_v57 = vmul.f32 %v2093_v5, %v2093_v5  ;;  %v2101_v5 = vld [vmem:[#allocation18_spill] sm:$0xff] }
  0x72   :  { %v572_v34 = vmul.f32 %v412_v32, %v412_v32  ;;  %v650_v26 = vsub.f32 %v490_v47, %v570_v55  ;;  %v728_v19 = vmul.f32 %v1014_v1, %v648_v37  ;;  %v806_v59 = vadd.f32 %v726_v3, %v566_v29 }
  0x73   :  { %v414_v10 = vmax.f32 %v2098_v51, 0.0  ;;  %v884_v17 = vadd.f32 %v883_v27, %v804_v50  ;;  %v1021_v24 = vunpack.c.l.bf16 %v1139_v18  ;;  %v2100_v25 = vsub.f32 2.0, %v2099_v2 }
  0x74   :  { %v493_v61 = vmul.f32 %v2095_v40, %v2095_v40  ;;  %v573_v36 = vmul.f32 %v413_v54, %v413_v54  ;;  %v651_v12 = vsub.f32 %v491_v33, %v571_v6  ;;  %v729_v45 = vmul.f32 %v1017_v48, %v649_v7  ;;  %v2103_v40 = vld [vmem:[#allocation19_spill] sm:$0xff]  ;;  %v1141_v33 = vld [vmem:[#allocation5 + $0x78] sm:$0xff]  }
  0x75   :  { %v415_v16 = vmax.f32 %v2100_v25, 0.0  ;;  %v807_v46 = vadd.f32 %v727_v30, %v567_v13  ;;  %v885_v35 = vadd.f32 %v884_v17, %v805_v38  ;;  %v1022_v0 = vunpack.c.h.bf16 %v1139_v18 }
  0x76   :  { %v2102_v32 = vsub.f32 2.0, %v2101_v5  ;;  %v494_v29 = vmul.f32 %v2097_v49, %v2097_v49  ;;  %v574_v1 = vmul.f32 %v414_v10, %v414_v10  ;;  %v652_v37 = vsub.f32 %v492_v57, %v572_v34  ;;  %v2105_v49 = vld [vmem:[#allocation20_spill] sm:$0xff] }
  0x77   :  { %v730_v3 = vmul.f32 %v1018_v60, %v650_v26  ;;  %v808_v50 = vadd.f32 %v728_v19, %v568_v62  ;;  %v886_v27 = vadd.f32 %v885_v35, %v806_v59  ;;  %v1025_v51 = vunpack.c.l.bf16 %v1140_v41 }
  0x78   :  { %v416_v47 = vmax.f32 %v2102_v32, 0.0  ;;  %v2104_v54 = vsub.f32 2.0, %v2103_v40  ;;  %v495_v13 = vmul.f32 %v2099_v2, %v2099_v2  ;;  %v575_v48 = vmul.f32 %v415_v16, %v415_v16  ;;  %v2107_v2 = vld [vmem:[#allocation21_spill] sm:$0xff] }
  0x79   :  { %v653_v18 = vsub.f32 %v493_v61, %v573_v36  ;;  %v731_v7 = vmul.f32 %v1021_v24, %v651_v12  ;;  %v809_v30 = vadd.f32 %v729_v45, %v569_v4  ;;  %v887_v38 = vadd.f32 %v886_v27, %v807_v46  ;;  %v1142_v61 = vld [vmem:[#allocation5 + $0x80] sm:$0xff]  }
  0x7a   :  { %v417_v25 = vmax.f32 %v2104_v54, 0.0  ;;  %v1026_v17 = vunpack.c.h.bf16 %v1140_v41  ;;  %v2106_v10 = vsub.f32 2.0, %v2105_v49  ;;  %v496_v62 = vmul.f32 %v2101_v5, %v2101_v5  ;;  %v2109_v5 = vld [vmem:[#allocation22_spill] sm:$0xff] }
  0x7b   :  { %v576_v60 = vmul.f32 %v416_v47, %v416_v47  ;;  %v654_v26 = vsub.f32 %v494_v29, %v574_v1  ;;  %v732_v19 = vmul.f32 %v1022_v0, %v652_v37  ;;  %v810_v59 = vadd.f32 %v730_v3, %v570_v55 }
  0x7c   :  { %v418_v57 = vmax.f32 %v2106_v10, 0.0  ;;  %v888_v35 = vadd.f32 %v887_v38, %v808_v50  ;;  %v1029_v32 = vunpack.c.l.bf16 %v1141_v33  ;;  %v2108_v16 = vsub.f32 2.0, %v2107_v2 }
  0x7d   :  { %v497_v4 = vmul.f32 %v2103_v40, %v2103_v40  ;;  %v577_v24 = vmul.f32 %v417_v25, %v417_v25  ;;  %v655_v41 = vsub.f32 %v495_v13, %v575_v48  ;;  %v733_v12 = vmul.f32 %v1025_v51, %v653_v18  ;;  %v2111_v40 = vld [vmem:[#allocation23_spill] sm:$0xff] }
  0x7e   :  { %v419_v54 = vmax.f32 %v2108_v16, 0.0  ;;  %v811_v45 = vadd.f32 %v731_v7, %v571_v6  ;;  %v889_v46 = vadd.f32 %v888_v35, %v809_v30  ;;  %v1030_v27 = vunpack.c.h.bf16 %v1141_v33  ;;  %v1143_v13 = vld [vmem:[#allocation5 + $0x88] sm:$0xff]  }
  0x7f   :  { %v2110_v47 = vsub.f32 2.0, %v2109_v5  ;;  %v498_v55 = vmul.f32 %v2105_v49, %v2105_v49  ;;  %v578_v0 = vmul.f32 %v418_v57, %v418_v57  ;;  %v656_v37 = vsub.f32 %v496_v62, %v576_v60  ;;  %v2113_v49 = vld [vmem:[#allocation24_spill] sm:$0xff] }
  0x80   :  { %v734_v3 = vmul.f32 %v1026_v17, %v654_v26  ;;  %v812_v50 = vadd.f32 %v732_v19, %v572_v34  ;;  %v890_v38 = vadd.f32 %v889_v46, %v810_v59  ;;  %v1033_v10 = vunpack.c.l.bf16 %v1142_v61 }
  0x81   :  { %v420_v29 = vmax.f32 %v2110_v47, 0.0  ;;  %v2112_v25 = vsub.f32 2.0, %v2111_v40  ;;  %v499_v6 = vmul.f32 %v2107_v2, %v2107_v2  ;;  %v579_v51 = vmul.f32 %v419_v54, %v419_v54  ;;  %v2115_v2 = vld [vmem:[#allocation25_spill] sm:$0xff] }
  0x82   :  { %v657_v33 = vsub.f32 %v497_v4, %v577_v24  ;;  %v735_v18 = vmul.f32 %v1029_v32, %v655_v41  ;;  %v813_v7 = vadd.f32 %v733_v12, %v573_v36  ;;  %v891_v30 = vadd.f32 %v890_v38, %v811_v45  ;;  %v1144_v4 = vld [vmem:[#allocation5 + $0x90] sm:$0xff]  }
  0x83   :  { %v421_v16 = vmax.f32 %v2112_v25, 0.0  ;;  %v1034_v35 = vunpack.c.h.bf16 %v1142_v61  ;;  %v2114_v57 = vsub.f32 2.0, %v2113_v49  ;;  %v500_v34 = vmul.f32 %v2109_v5, %v2109_v5  ;;  %v2117_v5 = vld [vmem:[#allocation26_spill] sm:$0xff] }
  0x84   :  { %v580_v17 = vmul.f32 %v420_v29, %v420_v29  ;;  %v658_v26 = vsub.f32 %v498_v55, %v578_v0  ;;  %v736_v19 = vmul.f32 %v1030_v27, %v656_v37  ;;  %v814_v59 = vadd.f32 %v734_v3, %v574_v1 }
  0x85   :  { %v422_v62 = vmax.f32 %v2114_v57, 0.0  ;;  %v892_v46 = vadd.f32 %v891_v30, %v812_v50  ;;  %v1037_v47 = vunpack.c.l.bf16 %v1143_v13  ;;  %v2116_v54 = vsub.f32 2.0, %v2115_v2 }
  0x86   :  { %v501_v36 = vmul.f32 %v2111_v40, %v2111_v40  ;;  %v581_v32 = vmul.f32 %v421_v16, %v421_v16  ;;  %v659_v61 = vsub.f32 %v499_v6, %v579_v51  ;;  %v737_v41 = vmul.f32 %v1033_v10, %v657_v33  ;;  %v2119_v40 = vld [vmem:[#allocation27_spill] sm:$0xff]  ;;  %v1145_v6 = vld [vmem:[#allocation5 + $0x98] sm:$0xff]  }
  0x87   :  { %v423_v25 = vmax.f32 %v2116_v54, 0.0  ;;  %v815_v12 = vadd.f32 %v735_v18, %v575_v48  ;;  %v893_v45 = vadd.f32 %v892_v46, %v813_v7  ;;  %v1038_v38 = vunpack.c.h.bf16 %v1143_v13 }
  0x88   :  { %v2118_v29 = vsub.f32 2.0, %v2117_v5  ;;  %v502_v1 = vmul.f32 %v2113_v49, %v2113_v49  ;;  %v582_v27 = vmul.f32 %v422_v62, %v422_v62  ;;  %v660_v37 = vsub.f32 %v500_v34, %v580_v17  ;;  %v2121_v49 = vld [vmem:[#allocation28_spill] sm:$0xff] }
  0x89   :  { %v738_v3 = vmul.f32 %v1034_v35, %v658_v26  ;;  %v816_v50 = vadd.f32 %v736_v19, %v576_v60  ;;  %v894_v30 = vadd.f32 %v893_v45, %v814_v59  ;;  %v1041_v57 = vunpack.c.l.bf16 %v1144_v4 }
  0x8a   :  { %v424_v55 = vmax.f32 %v2118_v29, 0.0  ;;  %v2120_v16 = vsub.f32 2.0, %v2119_v40  ;;  %v503_v48 = vmul.f32 %v2115_v2, %v2115_v2  ;;  %v583_v10 = vmul.f32 %v423_v25, %v423_v25  ;;  %v2123_v2 = vld [vmem:[#allocation29_spill] sm:$0xff] }
  0x8b   :  { %v661_v13 = vsub.f32 %v501_v36, %v581_v32  ;;  %v739_v33 = vmul.f32 %v1037_v47, %v659_v61  ;;  %v817_v18 = vadd.f32 %v737_v41, %v577_v24  ;;  %v895_v7 = vadd.f32 %v894_v30, %v815_v12  ;;  %v1146_v36 = vld [vmem:[#allocation5 + $0xa0] sm:$0xff]  }
  0x8c   :  { %v425_v54 = vmax.f32 %v2120_v16, 0.0  ;;  %v1042_v46 = vunpack.c.h.bf16 %v1144_v4  ;;  %v2122_v62 = vsub.f32 2.0, %v2121_v49  ;;  %v504_v60 = vmul.f32 %v2117_v5, %v2117_v5  ;;  %v2125_v5 = vld [vmem:[#allocation30_spill] sm:$0xff] }
  0x8d   :  { %v584_v35 = vmul.f32 %v424_v55, %v424_v55  ;;  %v662_v26 = vsub.f32 %v502_v1, %v582_v27  ;;  %v740_v19 = vmul.f32 %v1038_v38, %v660_v37  ;;  %v818_v59 = vadd.f32 %v738_v3, %v578_v0 }
  0x8e   :  { %v426_v34 = vmax.f32 %v2122_v62, 0.0  ;;  %v896_v45 = vadd.f32 %v895_v7, %v816_v50  ;;  %v1045_v29 = vunpack.c.l.bf16 %v1145_v6  ;;  %v2124_v25 = vsub.f32 2.0, %v2123_v2 }
  0x8f   :  { %v505_v24 = vmul.f32 %v2119_v40, %v2119_v40  ;;  %v585_v47 = vmul.f32 %v425_v54, %v425_v54  ;;  %v663_v4 = vsub.f32 %v503_v48, %v583_v10  ;;  %v741_v61 = vmul.f32 %v1041_v57, %v661_v13  ;;  %v2127_v40 = vld [vmem:[#allocation31_spill] sm:$0xff] }
  0x90   :  { %v427_v16 = vmax.f32 %v2124_v25, 0.0  ;;  %v819_v41 = vadd.f32 %v739_v33, %v579_v51  ;;  %v897_v12 = vadd.f32 %v896_v45, %v817_v18  ;;  %v1046_v30 = vunpack.c.h.bf16 %v1145_v6  ;;  %v1147_v48 = vld [vmem:[#allocation5 + $0xa8] sm:$0xff]  }
  0x91   :  { %v2126_v55 = vsub.f32 2.0, %v2125_v5  ;;  %v506_v0 = vmul.f32 %v2121_v49, %v2121_v49  ;;  %v586_v38 = vmul.f32 %v426_v34, %v426_v34  ;;  %v664_v37 = vsub.f32 %v504_v60, %v584_v35  ;;  %v2129_v49 = vld [vmem:[#allocation32_spill] sm:$0xff] }
  0x92   :  { %v742_v3 = vmul.f32 %v1042_v46, %v662_v26  ;;  %v820_v50 = vadd.f32 %v740_v19, %v580_v17  ;;  %v898_v7 = vadd.f32 %v897_v12, %v818_v59  ;;  %v1049_v62 = vunpack.c.l.bf16 %v1146_v36 }
  0x93   :  { %v428_v1 = vmax.f32 %v2126_v55, 0.0  ;;  %v2128_v54 = vsub.f32 2.0, %v2127_v40  ;;  %v507_v51 = vmul.f32 %v2123_v2, %v2123_v2  ;;  %v587_v57 = vmul.f32 %v427_v16, %v427_v16  ;;  %v2131_v2 = vld [vmem:[#allocation33_spill] sm:$0xff] }
  0x94   :  { %v665_v6 = vsub.f32 %v505_v24, %v585_v47  ;;  %v743_v13 = vmul.f32 %v1045_v29, %v663_v4  ;;  %v821_v33 = vadd.f32 %v741_v61, %v581_v32  ;;  %v899_v18 = vadd.f32 %v898_v7, %v819_v41  ;;  %v1148_v24 = vld [vmem:[#allocation5 + $0xb0] sm:$0xff]  }
  0x95   :  { %v429_v25 = vmax.f32 %v2128_v54, 0.0  ;;  %v1050_v45 = vunpack.c.h.bf16 %v1146_v36  ;;  %v2130_v34 = vsub.f32 2.0, %v2129_v49  ;;  %v508_v17 = vmul.f32 %v2125_v5, %v2125_v5  ;;  %v2133_v5 = vld [vmem:[#allocation34_spill] sm:$0xff] }
  0x96   :  { %v588_v46 = vmul.f32 %v428_v1, %v428_v1  ;;  %v666_v26 = vsub.f32 %v506_v0, %v586_v38  ;;  %v744_v19 = vmul.f32 %v1046_v30, %v664_v37  ;;  %v822_v59 = vadd.f32 %v742_v3, %v582_v27 }
  0x97   :  { %v430_v60 = vmax.f32 %v2130_v34, 0.0  ;;  %v900_v12 = vadd.f32 %v899_v18, %v820_v50  ;;  %v1053_v55 = vunpack.c.l.bf16 %v1147_v48  ;;  %v2132_v16 = vsub.f32 2.0, %v2131_v2 }
  0x98   :  { %v509_v32 = vmul.f32 %v2127_v40, %v2127_v40  ;;  %v589_v29 = vmul.f32 %v429_v25, %v429_v25  ;;  %v667_v36 = vsub.f32 %v507_v51, %v587_v57  ;;  %v745_v4 = vmul.f32 %v1049_v62, %v665_v6  ;;  %v2135_v40 = vld [vmem:[#allocation35_spill] sm:$0xff]  ;;  %v1149_v51 = vld [vmem:[#allocation5 + $0xb8] sm:$0xff]  }
  0x99   :  { %v431_v54 = vmax.f32 %v2132_v16, 0.0  ;;  %v823_v61 = vadd.f32 %v743_v13, %v583_v10  ;;  %v901_v41 = vadd.f32 %v900_v12, %v821_v33  ;;  %v1054_v7 = vunpack.c.h.bf16 %v1147_v48 }
  0x9a   :  { %v2134_v1 = vsub.f32 2.0, %v2133_v5  ;;  %v510_v27 = vmul.f32 %v2129_v49, %v2129_v49  ;;  %v590_v30 = vmul.f32 %v430_v60, %v430_v60  ;;  %v668_v37 = vsub.f32 %v508_v17, %v588_v46  ;;  %v2137_v49 = vld [vmem:[#allocation36_spill] sm:$0xff] }
  0x9b   :  { %v746_v3 = vmul.f32 %v1050_v45, %v666_v26  ;;  %v824_v50 = vadd.f32 %v744_v19, %v584_v35  ;;  %v902_v18 = vadd.f32 %v901_v41, %v822_v59  ;;  %v1057_v34 = vunpack.c.l.bf16 %v1148_v24 }
  0x9c   :  { %v432_v0 = vmax.f32 %v2134_v1, 0.0  ;;  %v2136_v25 = vsub.f32 2.0, %v2135_v40  ;;  %v511_v10 = vmul.f32 %v2131_v2, %v2131_v2  ;;  %v591_v62 = vmul.f32 %v431_v54, %v431_v54  ;;  %v2139_v2 = vld [vmem:[#allocation37_spill] sm:$0xff] }
  0x9d   :  { %v669_v48 = vsub.f32 %v509_v32, %v589_v29  ;;  %v747_v6 = vmul.f32 %v1053_v55, %v667_v36  ;;  %v825_v13 = vadd.f32 %v745_v4, %v585_v47  ;;  %v903_v33 = vadd.f32 %v902_v18, %v823_v61  ;;  %v1150_v32 = vld [vmem:[#allocation5 + $0xc0] sm:$0xff]  }
  0x9e   :  { %v433_v16 = vmax.f32 %v2136_v25, 0.0  ;;  %v1058_v12 = vunpack.c.h.bf16 %v1148_v24  ;;  %v2138_v60 = vsub.f32 2.0, %v2137_v49  ;;  %v512_v35 = vmul.f32 %v2133_v5, %v2133_v5  ;;  %v2141_v5 = vld [vmem:[#allocation38_spill] sm:$0xff] }
  0x9f   :  { %v592_v45 = vmul.f32 %v432_v0, %v432_v0  ;;  %v670_v26 = vsub.f32 %v510_v27, %v590_v30  ;;  %v748_v19 = vmul.f32 %v1054_v7, %v668_v37  ;;  %v826_v59 = vadd.f32 %v746_v3, %v586_v38 }
  0xa0   :  { %v434_v17 = vmax.f32 %v2138_v60, 0.0  ;;  %v904_v41 = vadd.f32 %v903_v33, %v824_v50  ;;  %v1061_v1 = vunpack.c.l.bf16 %v1149_v51  ;;  %v2140_v54 = vsub.f32 2.0, %v2139_v2 }
  0xa1   :  { %v513_v47 = vmul.f32 %v2135_v40, %v2135_v40  ;;  %v593_v55 = vmul.f32 %v433_v16, %v433_v16  ;;  %v671_v24 = vsub.f32 %v511_v10, %v591_v62  ;;  %v749_v36 = vmul.f32 %v1057_v34, %v669_v48  ;;  %v2143_v40 = vld [vmem:[#allocation39_spill] sm:$0xff] }
  0xa2   :  { %v435_v25 = vmax.f32 %v2140_v54, 0.0  ;;  %v827_v4 = vadd.f32 %v747_v6, %v587_v57  ;;  %v905_v61 = vadd.f32 %v904_v41, %v825_v13  ;;  %v1062_v18 = vunpack.c.h.bf16 %v1149_v51  ;;  %v1151_v10 = vld [vmem:[#allocation5 + $0xc8] sm:$0xff]  }
  0xa3   :  { %v2142_v0 = vsub.f32 2.0, %v2141_v5  ;;  %v514_v38 = vmul.f32 %v2137_v49, %v2137_v49  ;;  %v594_v7 = vmul.f32 %v434_v17, %v434_v17  ;;  %v672_v37 = vsub.f32 %v512_v35, %v592_v45  ;;  %v2145_v49 = vld [vmem:[#allocation40_spill] sm:$0xff] }
  0xa4   :  { %v750_v3 = vmul.f32 %v1058_v12, %v670_v26  ;;  %v828_v50 = vadd.f32 %v748_v19, %v588_v46  ;;  %v906_v33 = vadd.f32 %v905_v61, %v826_v59  ;;  %v1065_v60 = vunpack.c.l.bf16 %v1150_v32 }
  0xa5   :  { %v436_v27 = vmax.f32 %v2142_v0, 0.0  ;;  %v2144_v16 = vsub.f32 2.0, %v2143_v40  ;;  %v515_v57 = vmul.f32 %v2139_v2, %v2139_v2  ;;  %v595_v34 = vmul.f32 %v435_v25, %v435_v25  ;;  %v2147_v2 = vld [vmem:[#allocation41_spill] sm:$0xff] }
  0xa6   :  { %v673_v51 = vsub.f32 %v513_v47, %v593_v55  ;;  %v751_v48 = vmul.f32 %v1061_v1, %v671_v24  ;;  %v829_v6 = vadd.f32 %v749_v36, %v589_v29  ;;  %v907_v13 = vadd.f32 %v906_v33, %v827_v4  ;;  %v1152_v47 = vld [vmem:[#allocation5 + $0xd0] sm:$0xff]  }
  0xa7   :  { %v437_v54 = vmax.f32 %v2144_v16, 0.0  ;;  %v1066_v41 = vunpack.c.h.bf16 %v1150_v32  ;;  %v2146_v17 = vsub.f32 2.0, %v2145_v49  ;;  %v516_v46 = vmul.f32 %v2141_v5, %v2141_v5  ;;  %v2149_v5 = vld [vmem:[#allocation42_spill] sm:$0xff] }
  0xa8   :  { %v596_v12 = vmul.f32 %v436_v27, %v436_v27  ;;  %v674_v26 = vsub.f32 %v514_v38, %v594_v7  ;;  %v752_v19 = vmul.f32 %v1062_v18, %v672_v37  ;;  %v830_v59 = vadd.f32 %v750_v3, %v590_v30 }
  0xa9   :  { %v438_v35 = vmax.f32 %v2146_v17, 0.0  ;;  %v908_v61 = vadd.f32 %v907_v13, %v828_v50  ;;  %v1069_v0 = vunpack.c.l.bf16 %v1151_v10  ;;  %v2148_v25 = vsub.f32 2.0, %v2147_v2 }
  0xaa   :  { %v517_v29 = vmul.f32 %v2143_v40, %v2143_v40  ;;  %v597_v1 = vmul.f32 %v437_v54, %v437_v54  ;;  %v675_v32 = vsub.f32 %v515_v57, %v595_v34  ;;  %v753_v24 = vmul.f32 %v1065_v60, %v673_v51  ;;  %v2151_v40 = vld [vmem:[#allocation43_spill] sm:$0xff]  ;;  %v1153_v57 = vld [vmem:[#allocation5 + $0xd8] sm:$0xff]  }
  0xab   :  { %v439_v16 = vmax.f32 %v2148_v25, 0.0  ;;  %v831_v36 = vadd.f32 %v751_v48, %v591_v62  ;;  %v909_v4 = vadd.f32 %v908_v61, %v829_v6  ;;  %v1070_v33 = vunpack.c.h.bf16 %v1151_v10 }
  0xac   :  { %v2150_v27 = vsub.f32 2.0, %v2149_v5  ;;  %v518_v30 = vmul.f32 %v2145_v49, %v2145_v49  ;;  %v598_v18 = vmul.f32 %v438_v35, %v438_v35  ;;  %v676_v37 = vsub.f32 %v516_v46, %v596_v12  ;;  %v2153_v49 = vld [vmem:[#allocation44_spill] sm:$0xff] }
  0xad   :  { %v754_v3 = vmul.f32 %v1066_v41, %v674_v26  ;;  %v832_v50 = vadd.f32 %v752_v19, %v592_v45  ;;  %v910_v13 = vadd.f32 %v909_v4, %v830_v59  ;;  %v1073_v17 = vunpack.c.l.bf16 %v1152_v47 }
  0xae   :  { %v440_v38 = vmax.f32 %v2150_v27, 0.0  ;;  %v2152_v54 = vsub.f32 2.0, %v2151_v40  ;;  %v519_v62 = vmul.f32 %v2147_v2, %v2147_v2  ;;  %v599_v60 = vmul.f32 %v439_v16, %v439_v16  ;;  %v2155_v2 = vld [vmem:[#allocation46_spill] sm:$0xff] }
  0xaf   :  { %v677_v10 = vsub.f32 %v517_v29, %v597_v1  ;;  %v755_v51 = vmul.f32 %v1069_v0, %v675_v32  ;;  %v833_v48 = vadd.f32 %v753_v24, %v593_v55  ;;  %v911_v6 = vadd.f32 %v910_v13, %v831_v36  ;;  %v1154_v29 = vld [vmem:[#allocation5 + $0xe0] sm:$0xff]  }
  0xb0   :  { %v441_v25 = vmax.f32 %v2152_v54, 0.0  ;;  %v1074_v61 = vunpack.c.h.bf16 %v1152_v47  ;;  %v2154_v35 = vsub.f32 2.0, %v2153_v49  ;;  %v520_v45 = vmul.f32 %v2149_v5, %v2149_v5  ;;  %v2157_v5 = vld [vmem:[#allocation47_spill] sm:$0xff] }
  0xb1   :  { %v600_v41 = vmul.f32 %v440_v38, %v440_v38  ;;  %v678_v26 = vsub.f32 %v518_v30, %v598_v18  ;;  %v756_v19 = vmul.f32 %v1070_v33, %v676_v37  ;;  %v834_v59 = vadd.f32 %v754_v3, %v594_v7 }
  0xb2   :  { %v442_v46 = vmax.f32 %v2154_v35, 0.0  ;;  %v912_v4 = vadd.f32 %v911_v6, %v832_v50  ;;  %v1077_v27 = vunpack.c.l.bf16 %v1153_v57  ;;  %v2156_v16 = vsub.f32 2.0, %v2155_v2 }
  0xb3   :  { %v521_v55 = vmul.f32 %v2151_v40, %v2151_v40  ;;  %v601_v0 = vmul.f32 %v441_v25, %v441_v25  ;;  %v679_v47 = vsub.f32 %v519_v62, %v599_v60  ;;  %v757_v32 = vmul.f32 %v1073_v17, %v677_v10  ;;  %v2159_v40 = vld [vmem:[#allocation48_spill] sm:$0xff]  ;;  %v1155_v62 = vld [vmem:[#allocation5 + $0xe8] sm:$0xff]  }
  0xb4   :  { %v443_v54 = vmax.f32 %v2156_v16, 0.0  ;;  %v835_v24 = vadd.f32 %v755_v51, %v595_v34  ;;  %v913_v36 = vadd.f32 %v912_v4, %v833_v48  ;;  %v1078_v13 = vunpack.c.h.bf16 %v1153_v57 }
  0xb5   :  { %v2158_v38 = vsub.f32 2.0, %v2157_v5  ;;  %v522_v7 = vmul.f32 %v2153_v49, %v2153_v49  ;;  %v602_v33 = vmul.f32 %v442_v46, %v442_v46  ;;  %v680_v37 = vsub.f32 %v520_v45, %v600_v41  ;;  %v2161_v49 = vld [vmem:[#allocation50_spill] sm:$0xff] }
  0xb6   :  { %v758_v3 = vmul.f32 %v1074_v61, %v678_v26  ;;  %v836_v50 = vadd.f32 %v756_v19, %v596_v12  ;;  %v914_v6 = vadd.f32 %v913_v36, %v834_v59  ;;  %v1081_v35 = vunpack.c.l.bf16 %v1154_v29 }
  0xb7   :  { %v444_v30 = vmax.f32 %v2158_v38, 0.0  ;;  %v2160_v25 = vsub.f32 2.0, %v2159_v40  ;;  %v523_v34 = vmul.f32 %v2155_v2, %v2155_v2  ;;  %v603_v17 = vmul.f32 %v443_v54, %v443_v54  ;;  %v2163_v2 = vld [vmem:[#allocation51_spill] sm:$0xff] }
  0xb8   :  { %v681_v57 = vsub.f32 %v521_v55, %v601_v0  ;;  %v759_v10 = vmul.f32 %v1077_v27, %v679_v47  ;;  %v837_v51 = vadd.f32 %v757_v32, %v597_v1  ;;  %v915_v48 = vadd.f32 %v914_v6, %v835_v24  ;;  %v1156_v55 = vld [vmem:[#allocation5 + $0xf0] sm:$0xff]  }
  0xb9   :  { %v445_v16 = vmax.f32 %v2160_v25, 0.0  ;;  %v1082_v4 = vunpack.c.h.bf16 %v1154_v29  ;;  %v2162_v46 = vsub.f32 2.0, %v2161_v49  ;;  %v524_v12 = vmul.f32 %v2157_v5, %v2157_v5  ;;  %v2165_v5 = vld [vmem:[#allocation53_spill] sm:$0xff] }
  0xba   :  { %v604_v61 = vmul.f32 %v444_v30, %v444_v30  ;;  %v682_v26 = vsub.f32 %v522_v7, %v602_v33  ;;  %v760_v19 = vmul.f32 %v1078_v13, %v680_v37  ;;  %v838_v59 = vadd.f32 %v758_v3, %v598_v18 }
  0xbb   :  { %v446_v45 = vmax.f32 %v2162_v46, 0.0  ;;  %v916_v36 = vadd.f32 %v915_v48, %v836_v50  ;;  %v1085_v38 = vunpack.c.l.bf16 %v1155_v62  ;;  %v2164_v54 = vsub.f32 2.0, %v2163_v2 }
  0xbc   :  { %v525_v1 = vmul.f32 %v2159_v40, %v2159_v40  ;;  %v605_v27 = vmul.f32 %v445_v16, %v445_v16  ;;  %v683_v29 = vsub.f32 %v523_v34, %v603_v17  ;;  %v761_v47 = vmul.f32 %v1081_v35, %v681_v57  ;;  %v2167_v40 = vld [vmem:[#allocation54_spill] sm:$0xff]  ;;  %v1174_v34 = vld [vmem:[#allocation2 + $0x1f0] sm:$0xff]  ;;  %v1157_v57 = vld [vmem:[#allocation5 + $0xf8] sm:$0xff]  }
  0xbd   :  { %v447_v25 = vmax.f32 %v2164_v54, 0.0  ;;  %v839_v32 = vadd.f32 %v759_v10, %v599_v60  ;;  %v917_v24 = vadd.f32 %v916_v36, %v837_v51  ;;  %v1086_v6 = vunpack.c.h.bf16 %v1155_v62 }
  0xbe   :  { %v2166_v30 = vsub.f32 2.0, %v2165_v5  ;;  %v526_v18 = vmul.f32 %v2161_v49, %v2161_v49  ;;  %v606_v13 = vmul.f32 %v446_v45, %v446_v45  ;;  %v684_v37 = vsub.f32 %v524_v12, %v604_v61  ;;  %v1175_v12 = vld [vmem:[#allocation2 + $0x1f8] sm:$0xff] }
  0xbf   :  { %v762_v3 = vmul.f32 %v1082_v4, %v682_v26  ;;  %v840_v50 = vadd.f32 %v760_v19, %v600_v41  ;;  %v918_v48 = vadd.f32 %v917_v24, %v838_v59  ;;  %v1089_v46 = vunpack.c.l.bf16 %v1156_v55 }
  0xc0   :  { %v448_v7 = vmax.f32 %v2166_v30, 0.0  ;;  %v2168_v16 = vsub.f32 2.0, %v2167_v40  ;;  %v527_v35 = vmul.f32 %v1174_v34, %v1174_v34  ;;  %v607_v60 = vmul.f32 %v447_v25, %v447_v25  ;;  %v2170_v30 = vld [vmem:[#allocation55_spill] sm:$0xff] }
  0xc1   :  { %v685_v62 = vsub.f32 %v525_v1, %v605_v27  ;;  %v763_v10 = vmul.f32 %v1085_v38, %v683_v29  ;;  %v841_v51 = vadd.f32 %v761_v47, %v601_v0  ;;  %v919_v36 = vadd.f32 %v918_v48, %v839_v32  ;;  %v1158_v0 = vld [vmem:[#allocation5 + $0x100] sm:$0xff]  }
  0xc2   :  { %v449_v2 = vmax.f32 %v2168_v16, 0.0  ;;  %v1090_v54 = vunpack.c.h.bf16 %v1156_v55  ;;  %v2169_v49 = vsub.f32 2.0, %v1591_v44  ;;  %v528_v4 = vmul.f32 %v1175_v12, %v1175_v12  ;;  %v1176_v16 = vld [vmem:[#allocation2 + $0x200] sm:$0xff] }
  0xc3   :  { %v608_v41 = vmul.f32 %v448_v7, %v448_v7  ;;  %v686_v26 = vsub.f32 %v526_v18, %v606_v13  ;;  %v764_v19 = vmul.f32 %v1086_v6, %v684_v37  ;;  %v842_v59 = vadd.f32 %v762_v3, %v602_v33  ;;  %v1177_v18 = vld [vmem:[#allocation2 + $0x208] sm:$0xff] }
  0xc4   :  { %v450_v45 = vmax.f32 %v2169_v49, 0.0  ;;  %v920_v24 = vadd.f32 %v919_v36, %v840_v50  ;;  %v1093_v5 = vunpack.c.l.bf16 %v1157_v57  ;;  %v2171_v40 = vsub.f32 2.0, %v2170_v30  ;;  %v1178_v36 = vld [vmem:[#allocation2 + $0x210] sm:$0xff]  ;;  %v1179_v49 = vld [vmem:[#allocation2 + $0x218] sm:$0xff] }
  0xc5   :  { %v529_v1 = vmul.f32 %v1176_v16, %v1176_v16  ;;  %v609_v38 = vmul.f32 %v449_v2, %v449_v2  ;;  %v687_v29 = vsub.f32 %v527_v35, %v607_v60  ;;  %v765_v55 = vmul.f32 %v1089_v46, %v685_v62 }
  0xc6   :  { %v451_v25 = vmax.f32 %v2171_v40, 0.0  ;;  %v843_v47 = vadd.f32 %v763_v10, %v603_v17  ;;  %v921_v44 = vadd.f32 %v920_v24, %v841_v51  ;;  %v1094_v32 = vunpack.c.h.bf16 %v1157_v57  ;;  %v1159_v17 = vld [vmem:[#allocation5 + $0x108] sm:$0xff]  }
  0xc7   :  { %v452_v7 = vmax.f32 %v372_v43, 0.0  ;;  %v530_v6 = vmul.f32 %v1177_v18, %v1177_v18  ;;  %v610_v33 = vmul.f32 %v450_v45, %v450_v45  ;;  %v688_v37 = vsub.f32 %v528_v4, %v608_v41 }
  0xc8   :  { %v766_v3 = vmul.f32 %v1090_v54, %v686_v26  ;;  %v844_v50 = vadd.f32 %v764_v19, %v604_v61  ;;  %v922_v48 = vadd.f32 %v921_v44, %v842_v59  ;;  %v1097_v34 = vunpack.c.l.bf16 %v1158_v0  ;;  %v1180_v19 = vld [vmem:[#allocation2 + $0x220] sm:$0xff] }
  0xc9   :  { %v453_v2 = vmax.f32 %v373_v21, 0.0  ;;  %v531_v35 = vmul.f32 %v1178_v36, %v1178_v36  ;;  %v611_v46 = vmul.f32 %v451_v25, %v451_v25  ;;  %v689_v62 = vsub.f32 %v529_v1, %v609_v38 }
  0xca   :  { %v767_v57 = vmul.f32 %v1093_v5, %v687_v29  ;;  %v845_v10 = vadd.f32 %v765_v55, %v605_v27  ;;  %v923_v53 = vadd.f32 %v922_v48, %v843_v47  ;;  %v1098_v43 = vunpack.c.h.bf16 %v1158_v0  ;;  %v1160_v27 = vld [vmem:[#allocation5 + $0x110] sm:$0xff]  }
  0xcb   :  { %v454_v51 = vmax.f32 %v374_v28, 0.0  ;;  %v532_v54 = vmul.f32 %v1179_v49, %v1179_v49  ;;  %v612_v61 = vmul.f32 %v452_v7, %v452_v7  ;;  %v690_v45 = vsub.f32 %v530_v6, %v610_v33  ;;  %v1161_v7 = vld [vmem:[#allocation5 + $0x118] sm:$0xff]  }
  0xcc   :  { %v768_v12 = vmul.f32 %v1094_v32, %v688_v37  ;;  %v846_v4 = vadd.f32 %v766_v3, %v606_v13  ;;  %v924_v9 = vadd.f32 %v923_v53, %v844_v50  ;;  %v1101_v21 = vunpack.c.l.bf16 %v1159_v17 }
  0xcd   :  { %v455_v26 = vmax.f32 %v375_v39, 0.0  ;;  %v533_v59 = vmul.f32 %v1180_v19, %v1180_v19  ;;  %v613_v24 = vmul.f32 %v453_v2, %v453_v2  ;;  %v691_v5 = vsub.f32 %v531_v35, %v611_v46 }
  0xce   :  { %v769_v30 = vmul.f32 %v1097_v34, %v689_v62  ;;  %v847_v40 = vadd.f32 %v767_v57, %v607_v60  ;;  %v925_v25 = vadd.f32 %v924_v9, %v845_v10  ;;  %v1102_v28 = vunpack.c.h.bf16 %v1159_v17  ;;  %v1162_v57 = vld [vmem:[#allocation5 + $0x120] sm:$0xff]  }
  0xcf   :  { %v456_v16 = vmax.f32 %v376_v8, 0.0  ;;  %v534_v13 = vmul.f32 %v1628_v58, %v1628_v58  ;;  %v614_v1 = vmul.f32 %v454_v51, %v454_v51  ;;  %v692_v0 = vsub.f32 %v532_v54, %v612_v61 }
  0xd0   :  { %v770_v29 = vmul.f32 %v1098_v43, %v690_v45  ;;  %v848_v55 = vadd.f32 %v768_v12, %v608_v41  ;;  %v926_v39 = vadd.f32 %v925_v25, %v846_v4  ;;  %v1105_v47 = vunpack.c.l.bf16 %v1160_v27 }
  0xd1   :  { %v457_v44 = vmax.f32 %v377_v20, 0.0  ;;  %v535_v60 = vmul.f32 %v1637_v15, %v1637_v15  ;;  %v615_v32 = vmul.f32 %v455_v26, %v455_v26  ;;  %v693_v18 = vsub.f32 %v533_v59, %v613_v24 }
  0xd2   :  { %v771_v6 = vmul.f32 %v1101_v21, %v691_v5  ;;  %v849_v8 = vadd.f32 %v769_v30, %v609_v38  ;;  %v927_v37 = vadd.f32 %v926_v39, %v847_v40  ;;  %v1106_v3 = vunpack.c.h.bf16 %v1160_v27  ;;  %v1163_v27 = vld [vmem:[#allocation5 + $0x128] sm:$0xff]  }
  0xd3   :  { %v2172_v58 = vsub.f32 2.0, %v1662_v23  ;;  %v536_v41 = vmul.f32 %v1643_v14, %v1643_v14  ;;  %v616_v48 = vmul.f32 %v456_v16, %v456_v16  ;;  %v694_v34 = vsub.f32 %v534_v13, %v614_v1 }
  0xd4   :  { %v772_v2 = vmul.f32 %v1102_v28, %v692_v0  ;;  %v850_v20 = vadd.f32 %v770_v29, %v610_v33  ;;  %v928_v36 = vadd.f32 %v927_v37, %v848_v55  ;;  %v1109_v35 = vunpack.c.l.bf16 %v1161_v7 }
  0xd5   :  { %v458_v50 = vmax.f32 %v2172_v58, 0.0  ;;  %v2173_v15 = vsub.f32 2.0, %v1668_v56  ;;  %v537_v38 = vmul.f32 %v1653_v42, %v1653_v42  ;;  %v617_v62 = vmul.f32 %v457_v44, %v457_v44 }
  0xd6   :  { %v695_v10 = vsub.f32 %v535_v60, %v615_v32  ;;  %v773_v53 = vmul.f32 %v1105_v47, %v693_v18  ;;  %v851_v43 = vadd.f32 %v771_v6, %v611_v46  ;;  %v929_v51 = vadd.f32 %v928_v36, %v849_v8 }
  0xd7   :  { %v459_v17 = vmax.f32 %v2173_v15, 0.0  ;;  %v1110_v49 = vunpack.c.h.bf16 %v1161_v7  ;;  %v2174_v14 = vsub.f32 2.0, %v1678_v11  ;;  %v538_v33 = vmul.f32 %v1662_v23, %v1662_v23  ;;  %v1164_v7 = vld [vmem:[#allocation5 + $0x130] sm:$0xff]   ;;  %v1165_v15 = vld [vmem:[#allocation5 + $0x138] sm:$0xff]  }
  0xd8   :  { %v618_v45 = vmul.f32 %v458_v50, %v458_v50  ;;  %v696_v12 = vsub.f32 %v536_v41, %v616_v48  ;;  %v774_v4 = vmul.f32 %v1106_v3, %v694_v34  ;;  %v852_v9 = vadd.f32 %v772_v2, %v612_v61 }
  0xd9   :  { %v460_v54 = vmax.f32 %v2174_v14, 0.0  ;;  %v930_v21 = vadd.f32 %v929_v51, %v850_v20  ;;  %v1113_v26 = vunpack.c.l.bf16 %v1162_v57  ;;  %v2175_v42 = vsub.f32 2.0, %v1687_v31 }
  0xda   :  { %v539_v46 = vmul.f32 %v1668_v56, %v1668_v56  ;;  %v619_v59 = vmul.f32 %v459_v17, %v459_v17  ;;  %v697_v5 = vsub.f32 %v537_v38, %v617_v62  ;;  %v775_v30 = vmul.f32 %v1109_v35, %v695_v10 }
  0xdb   :  { %v461_v19 = vmax.f32 %v2175_v42, 0.0  ;;  %v853_v40 = vadd.f32 %v773_v53, %v613_v24  ;;  %v931_v25 = vadd.f32 %v930_v21, %v851_v43  ;;  %v1114_v28 = vunpack.c.h.bf16 %v1162_v57 }
  0xdc   :  { %v2176_v23 = vsub.f32 2.0, %v1693_v52  ;;  %v540_v61 = vmul.f32 %v1678_v11, %v1678_v11  ;;  %v620_v13 = vmul.f32 %v460_v54, %v460_v54  ;;  %v698_v0 = vsub.f32 %v538_v33, %v618_v45 }
  0xdd   :  { %v776_v29 = vmul.f32 %v1110_v49, %v696_v12  ;;  %v854_v55 = vadd.f32 %v774_v4, %v614_v1  ;;  %v932_v39 = vadd.f32 %v931_v25, %v852_v9  ;;  %v1117_v47 = vunpack.c.l.bf16 %v1163_v27 }
  0xde   :  { %v462_v16 = vmax.f32 %v2176_v23, 0.0  ;;  %v2177_v56 = vsub.f32 2.0, %v1703_v22  ;;  %v541_v24 = vmul.f32 %v1687_v31, %v1687_v31  ;;  %v621_v60 = vmul.f32 %v461_v19, %v461_v19 }
  0xdf   :  { %v699_v18 = vsub.f32 %v539_v46, %v619_v59  ;;  %v777_v6 = vmul.f32 %v1113_v26, %v697_v5  ;;  %v855_v8 = vadd.f32 %v775_v30, %v615_v32  ;;  %v933_v37 = vadd.f32 %v932_v39, %v853_v40 }
  0xe0   :  { %v463_v44 = vmax.f32 %v2177_v56, 0.0  ;;  %v1118_v3 = vunpack.c.h.bf16 %v1163_v27  ;;  %v2178_v11 = vsub.f32 2.0, %v1710_v63  ;;  %v542_v1 = vmul.f32 %v1693_v52, %v1693_v52 }
  0xe1   :  { %v622_v50 = vmul.f32 %v462_v16, %v462_v16  ;;  %v700_v41 = vsub.f32 %v540_v61, %v620_v13  ;;  %v778_v34 = vmul.f32 %v1114_v28, %v698_v0  ;;  %v856_v2 = vadd.f32 %v776_v29, %v616_v48 }
  0xe2   :  { %v464_v58 = vmax.f32 %v2178_v11, 0.0  ;;  %v934_v20 = vadd.f32 %v933_v37, %v854_v55  ;;  %v1121_v36 = vunpack.c.l.bf16 %v1164_v7  ;;  %v543_v31 = vmul.f32 %v1703_v22, %v1703_v22 }
  0xe3   :  { %v623_v35 = vmul.f32 %v463_v44, %v463_v44  ;;  %v701_v32 = vsub.f32 %v541_v24, %v621_v60  ;;  %v779_v17 = vmul.f32 %v1117_v47, %v699_v18  ;;  %v857_v38 = vadd.f32 %v777_v6, %v617_v62 }
  0xe4   :  { %v935_v57 = vadd.f32 %v934_v20, %v855_v8  ;;  %v1122_v10 = vunpack.c.h.bf16 %v1164_v7  ;;  %v544_v53 = vmul.f32 %v1710_v63, %v1710_v63  ;;  %v624_v52 = vmul.f32 %v464_v58, %v464_v58 }
  0xe5   :  { %v702_v43 = vsub.f32 %v542_v1, %v622_v50  ;;  %v780_v51 = vmul.f32 %v1118_v3, %v700_v41  ;;  %v858_v49 = vadd.f32 %v778_v34, %v618_v45  ;;  %v1125_v14 = vunpack.c.l.bf16 %v1165_v15 }
  0xe6   :  { %v936_v48 = vadd.f32 %v935_v57, %v856_v2  ;;  %v703_v54 = vsub.f32 %v543_v31, %v623_v35  ;;  %v781_v33 = vmul.f32 %v1121_v36, %v701_v32  ;;  %v859_v12 = vadd.f32 %v779_v17, %v619_v59 }
  0xe7   :  { %v1126_v4 = vunpack.c.h.bf16 %v1165_v15  ;;  %v704_v9 = vsub.f32 %v544_v53, %v624_v52  ;;  %v782_v21 = vmul.f32 %v1122_v10, %v702_v43  ;;  %v860_v26 = vadd.f32 %v780_v51, %v620_v13 }
  0xe8   :  { %v937_v22 = vadd.f32 %v936_v48, %v857_v38  ;;  %v783_v42 = vmul.f32 %v1125_v14, %v703_v54  ;;  %v861_v19 = vadd.f32 %v781_v33, %v621_v60 }
  0xe9   :  { %v784_v27 = vmul.f32 %v1126_v4, %v704_v9  ;;  %v862_v63 = vadd.f32 %v782_v21, %v622_v50 }
  0xea   :  { %v938_v62 = vadd.f32 %v937_v22, %v858_v49  ;;  %v863_v30 = vadd.f32 %v783_v42, %v623_v35 }
  0xeb   :  { %v864_v45 = vadd.f32 %v784_v27, %v624_v52 }
  0xec   :  { %v939_v46 = vadd.f32 %v938_v62, %v859_v12 }
  0xee   :  { %v940_v5 = vadd.f32 %v939_v46, %v860_v26 }
  0xf0   :  { %v941_v40 = vadd.f32 %v940_v5, %v861_v19 }
  0xf2   :  { %v942_v25 = vadd.f32 %v941_v40, %v862_v63 }
  0xf4   :  { %v943_v28 = vadd.f32 %v942_v25, %v863_v30 }
  0xf6   :  { %v944_v59 = vadd.f32 %v943_v28, %v864_v45 }
  0xf8   :  { %946 = vst [vmem:[#allocation7] sm:$0xff] %v944_v59 }
  0xf9   :  { %1236 = shalt.err (!%p1233_p6)
}
  0xfa   :  { %s1237_s12 = scalar_lea.hbm %s1934_s2, 128 }
  0xfb   :  { %p1238_p7 = scmp.ne.s32.totalorder %s1934_s2, %s1237_s12  ;;  %p1241_p8 = scmp.lt.u32.totalorder %s1237_s12, %s1934_s2 }
  0xfd   :  { %p1243_p9 = pnand %p1241_p8, %p1238_p7 }
  0xff   :  { %1246 = shalt.err (!%p1243_p9)
}
 0x100   :  { %956 = dma.vmem_to_hbm [thread:$0]  %s954_s8, 128, %s1934_s2, [#allocation4]  }
 0x101   :  { %1251 = dma.done.wait [#allocation4], 128  }
 0x102   :  { %1252 = vsyncadd [#allocation4], 4294967168 }
 0x103   :  { %960 = vsyncpa [#allocation3], 1 }
 0x104   :  { %961 = vsyncpa [#allocation6], 1 }
 0x105   :  { %962 = vsyncpa [#allocation4], 1 }

</bundles_post_ra>
